<compile_context>
chip_gen: v7x
topology: tpu7x:2x2x1
jax: 0.10.0
libtpu: 0.0.40
codegen_flags: <defaults>
</compile_context>

<pallas_src>
import functools

import jax
import jax.numpy as jnp
from jax.experimental import pallas as pl
from jax.experimental.pallas import tpu as pltpu

# ---------------- scaled-down BLIP_Base hyper-parameters ---------------------
IMG_SIZE = 16          # 224 in the real model
PATCH = 8              # 16
IN_CHANS = 3
VIS_DIM = 32           # vision_width (768 for vit='base')
VIS_DEPTH = 2          # 12
VIS_HEADS = 4          # 12
TXT_DIM = 32           # BERT hidden (768), encoder_width == vision_width
TXT_DEPTH = 2          # 12
TXT_HEADS = 4          # 12
MLP_RATIO = 4
VOCAB = 64
MAX_POS = 16
CLS_TOKEN_ID = 0       # tokenizer CLS stand-in
ENC_TOKEN_ID = 1       # tokenizer.enc_token_id stand-in

# TODO(synk): the HuggingFace BertTokenizer (host-side string -> token ids) has no
# Pallas equivalent; synthetic deterministic token ids are used instead of `caption`.

_CPARAMS = pltpu.CompilerParams(
    dimension_semantics=("parallel",),        # v7x: both TCs share the batch axis
    vmem_limit_bytes=32 * 1024 * 1024,
)


# ------------------------------- spec helpers --------------------------------
def _shared_spec(a):
    """Whole array resident in VMEM; same block every grid step (weights/tables)."""
    nd = a.ndim
    return pl.BlockSpec(a.shape, lambda *_, _nd=nd: (0,) * _nd)


def _batch_spec(shape):
    """Per-batch block: batch dim squeezed, remaining dims full."""
    nd = len(shape)
    return pl.BlockSpec((None,) + tuple(shape),
                        lambda b, *_, _nd=nd: (b,) + (0,) * _nd)


# --------------------- in-kernel math helpers (on values) --------------------
def _ln(x, g, b, eps):
    mu = jnp.mean(x, axis=-1, keepdims=True)
    var = jnp.mean(jnp.square(x - mu), axis=-1, keepdims=True)
    return (x - mu) * jax.lax.rsqrt(var + eps) * g + b


def _gelu(x):
    # TODO(synk): torch nn.GELU / BERT "gelu" are exact-erf; tanh approximation is
    # used because lax.erf has no guaranteed Mosaic lowering.
    c = 0.7978845608028654  # sqrt(2/pi)
    return 0.5 * x * (1.0 + jnp.tanh(c * (x + 0.044715 * x * x * x)))


def _dense(x, w, b):
    """bf16 operands on the MXU, f32 accumulation, f32 bias add."""
    return jnp.dot(x.astype(jnp.bfloat16), w,
                   preferred_element_type=jnp.float32) + b


def _mha_ctx(qb, kb, vb, mask_add, ctx_ref, num_heads):
    """Per-head attention; PV results are placed in lane slices of ctx_ref.

    qb: (Sq, D), kb/vb: (Sk, D) bf16; mask_add: (1, Sk) additive mask or None.
    Returns the assembled (Sq, D) f32 context so a single (Sq,D)@(D,Dout) output
    projection can follow (no per-head 8-wide projection matmuls).
    """
    D = qb.shape[-1]
    hd = D // num_heads
    scale = hd ** -0.5
    for i in range(num_heads):
        sl = slice(i * hd, (i + 1) * hd)
        s = jax.lax.dot_general(qb[:, sl], kb[:, sl], (((1,), (1,)), ((), ())),
                                preferred_element_type=jnp.float32) * scale
        if mask_add is not None:
            s = s + mask_add
        s = s - jnp.max(s, axis=-1, keepdims=True)
        p = jnp.exp(s)
        p = p * pl.reciprocal(jnp.sum(p, axis=-1, keepdims=True), approx=True)
        ctx_ref[:, sl] = jnp.dot(p.astype(jnp.bfloat16), vb[:, sl],
                                 preferred_element_type=jnp.float32)
    return ctx_ref[...]


def _attention(x, mask_add, qkv_w, qkv_b, o_w, ctx_ref, num_heads):
    """Fused-QKV self-attention; output-projection bias is added by the caller."""
    D = x.shape[-1]
    qkvb = _dense(x, qkv_w, qkv_b).astype(jnp.bfloat16)   # single f32->bf16 cast
    c = _mha_ctx(qkvb[:, :D], qkvb[:, D:2 * D], qkvb[:, 2 * D:],
                 mask_add, ctx_ref, num_heads)
    return jnp.dot(c.astype(jnp.bfloat16), o_w, preferred_element_type=jnp.float32)


def _ffn(x, fi_w, fi_b, fo_w, fo_b):
    return _dense(_gelu(_dense(x, fi_w, fi_b)), fo_w, fo_b)


# ----------------------------- Pallas kernels --------------------------------
def _vit_kernel(patch_ref, pw_ref, pb_ref, cls_ref, pos_ref,
                ln1_g, ln1_b, qkv_w, qkv_b, o_w, o_b,
                ln2_g, ln2_b, fc1_w, fc1_b, fc2_w, fc2_b,
                ng_ref, nb_ref, o_ref, xbuf, ctx, *, num_heads, eps):
    S = o_ref.shape[0]
    # patch embedding (conv stride==kernel == unfolded matmul) + position embedding;
    # the CLS row is written separately (no zero-row concat / extra HBM copy).
    emb = (jnp.dot(patch_ref[...], pw_ref[...],
                   preferred_element_type=jnp.float32) + pb_ref[...])
    xbuf[1:S, :] = emb + pos_ref[1:S, :]
    xbuf[0:1, :] = cls_ref[...] + pos_ref[0:1, :]
    x = xbuf[...]
    for li in range(qkv_w.shape[0]):            # static unroll over depth
        # pre-LN self-attention (ViT mask is identically zero -> skipped)
        h = _ln(x, ln1_g[li], ln1_b[li], eps)
        x = x + _attention(h, None, qkv_w[li], qkv_b[li], o_w[li],
                           ctx, num_heads) + o_b[li]
        # pre-LN MLP
        h = _ln(x, ln2_g[li], ln2_b[li], eps)
        x = x + _ffn(h, fc1_w[li], fc1_b[li], fc2_w[li], fc2_b[li])
    o_ref[...] = _ln(x, ng_ref[...], nb_ref[...], eps).astype(o_ref.dtype)


def _embed_tokens(ids_ref, wemb_ref, pos_ref, typ_ref, eg_ref, eb_ref, xbuf,
                  *, seq_len, eps):
    """In-kernel token-embedding gather + BERT embeddings LayerNorm."""
    b = pl.program_id(0)
    for s in range(seq_len):
        tok = ids_ref[b, s]                               # scalar from SMEM
        xbuf[pl.ds(s, 1), :] = wemb_ref[pl.ds(tok, 1), :]  # dynamic row from VMEM
    x = xbuf[...] + pos_ref[...] + typ_ref[...]
    return _ln(x, eg_ref[...], eb_ref[...], eps)


def _bert_text_kernel(ids_ref, m_ref, wemb_ref, pos_ref, typ_ref, eg_ref, eb_ref,
                      qkv_w, qkv_b, so_w, so_b, sln_g, sln_b,
                      fi_w, fi_b, fo_w, fo_b, oln_g, oln_b,
                      o_ref, xbuf, ctx, *, num_heads, eps, seq_len):
    x = _embed_tokens(ids_ref, wemb_ref, pos_ref, typ_ref, eg_ref, eb_ref, xbuf,
                      seq_len=seq_len, eps=eps)
    # additive mask built in-kernel from the int attention mask (one vreg of VPU)
    mask_add = (1.0 - m_ref[...].astype(jnp.float32)) * -10000.0
    for li in range(qkv_w.shape[0]):
        # self-attention (post-LN)
        a = _attention(x, mask_add, qkv_w[li], qkv_b[li], so_w[li], ctx, num_heads)
        x = _ln(x + a + so_b[li], sln_g[li], sln_b[li], eps)
        # FFN (post-LN)
        x = _ln(x + _ffn(x, fi_w[li], fi_b[li], fo_w[li], fo_b[li]),
                oln_g[li], oln_b[li], eps)
    o_ref[...] = x.astype(o_ref.dtype)


def _bert_mm_kernel(ids_ref, m_ref, enc_ref, wemb_ref, pos_ref, typ_ref,
                    eg_ref, eb_ref,
                    qkv_w, qkv_b, so_w, so_b, sln_g, sln_b,
                    cq_w, cq_b, ckv_w, ckv_b, co_w, co_b, cln_g, cln_b,
                    fi_w, fi_b, fo_w, fo_b, oln_g, oln_b,
                    o_ref, xbuf, ctx, *, num_heads, eps, seq_len):
    x = _embed_tokens(ids_ref, wemb_ref, pos_ref, typ_ref, eg_ref, eb_ref, xbuf,
                      seq_len=seq_len, eps=eps)
    mask_add = (1.0 - m_ref[...].astype(jnp.float32)) * -10000.0
    enc = enc_ref[...]                                     # (Se, De) image tokens
    D = x.shape[-1]
    for li in range(qkv_w.shape[0]):
        # self-attention (post-LN)
        a = _attention(x, mask_add, qkv_w[li], qkv_b[li], so_w[li], ctx, num_heads)
        x = _ln(x + a + so_b[li], sln_g[li], sln_b[li], eps)
        # cross-attention over image tokens (image_atts == 1 -> additive mask 0 -> skipped)
        qb = _dense(x, cq_w[li], cq_b[li]).astype(jnp.bfloat16)
        kvb = _dense(enc, ckv_w[li], ckv_b[li]).astype(jnp.bfloat16)
        c = _mha_ctx(qb, kvb[:, :D], kvb[:, D:], None, ctx, num_heads)
        a = jnp.dot(c.astype(jnp.bfloat16), co_w[li],
                    preferred_element_type=jnp.float32)
        x = _ln(x + a + co_b[li], cln_g[li], cln_b[li], eps)
        # FFN (post-LN)
        x = _ln(x + _ffn(x, fi_w[li], fi_b[li], fo_w[li], fo_b[li]),
                oln_g[li], oln_b[li], eps)
    o_ref[...] = x.astype(o_ref.dtype)


# --------------------------- model forward passes -----------------------------
def vit_forward(p, image):
    """Vision Transformer (pre-LN), one fused pallas_call.  image: NCHW f32."""
    B, C, H, W = image.shape
    P = PATCH
    nh, nw = H // P, W // P
    Np = nh * nw
    S = Np + 1
    D = VIS_DIM
    Cpp = C * P * P
    # conv(kernel=stride=P) == patch unfold + matmul; patch vector order = (C, Ph, Pw)
    patches = (image.reshape(B, C, nh, P, nw, P)
               .transpose(0, 2, 4, 1, 3, 5)
               .reshape(B, Np, Cpp)).astype(jnp.bfloat16)
    args = [patches, p["patch_w"], p["patch_b"], p["cls_token"], p["pos_embed"],
            p["ln1_g"], p["ln1_b"], p["qkv_w"], p["qkv_b"], p["o_w"], p["o_b"],
            p["ln2_g"], p["ln2_b"], p["fc1_w"], p["fc1_b"], p["fc2_w"], p["fc2_b"],
            p["norm_g"], p["norm_b"]]
    in_specs = [_batch_spec((Np, Cpp))] + [_shared_spec(a) for a in args[1:]]
    return pl.pallas_call(
        functools.partial(_vit_kernel, num_heads=VIS_HEADS, eps=1e-6),
        out_shape=jax.ShapeDtypeStruct((B, S, D), jnp.float32),
        grid=(B,),
        in_specs=in_specs,
        out_specs=_batch_spec((S, D)),
        scratch_shapes=[pltpu.VMEM((S, D), jnp.float32),    # xbuf
                        pltpu.VMEM((S, D), jnp.float32)],   # ctx
        compiler_params=_CPARAMS,
    )(*args)


def bert_forward(p, input_ids, attention_mask, enc_hidden=None):
    """BERT-style text encoder (post-LN), one fused pallas_call.

    Cross-attention over `enc_hidden` (image tokens) when it is given.
    """
    B, S = input_ids.shape
    D = TXT_DIM
    mask3 = attention_mask.astype(jnp.int32).reshape(B, 1, S)   # metadata-only reshape
    pos = p["pos_emb"][:S]
    typ = p["type_emb"][0:1]

    if enc_hidden is None:
        args = [mask3, p["word_emb"], pos, typ, p["emb_ln_g"], p["emb_ln_b"],
                p["qkv_w"], p["qkv_b"], p["so_w"], p["so_b"], p["sln_g"], p["sln_b"],
                p["inter_w"], p["inter_b"], p["out_w"], p["out_b"],
                p["oln_g"], p["oln_b"]]
        kernel = functools.partial(_bert_text_kernel, num_heads=TXT_HEADS,
                                   eps=1e-12, seq_len=S)
        in_specs = [_batch_spec((1, S))] + [_shared_spec(a) for a in args[1:]]
    else:
        Se, De = enc_hidden.shape[1], enc_hidden.shape[2]
        args = [mask3, enc_hidden, p["word_emb"], pos, typ,
                p["emb_ln_g"], p["emb_ln_b"],
                p["qkv_w"], p["qkv_b"], p["so_w"], p["so_b"], p["sln_g"], p["sln_b"],
                p["cq_w"], p["cq_b"], p["ckv_w"], p["ckv_b"],
                p["co_w"], p["co_b"], p["cln_g"], p["cln_b"],
                p["inter_w"], p["inter_b"], p["out_w"], p["out_b"],
                p["oln_g"], p["oln_b"]]
        kernel = functools.partial(_bert_mm_kernel, num_heads=TXT_HEADS,
                                   eps=1e-12, seq_len=S)
        in_specs = ([_batch_spec((1, S)), _batch_spec((Se, De))]
                    + [_shared_spec(a) for a in args[2:]])

    grid_spec = pltpu.PrefetchScalarGridSpec(
        num_scalar_prefetch=1,                    # input_ids -> SMEM
        grid=(B,),
        in_specs=in_specs,
        out_specs=_batch_spec((S, D)),
        scratch_shapes=[pltpu.VMEM((S, D), jnp.float32),     # xbuf (token embeds)
                        pltpu.VMEM((S, D), jnp.float32)])    # ctx (attention heads)
    return pl.pallas_call(
        kernel,
        grid_spec=grid_spec,
        out_shape=jax.ShapeDtypeStruct((B, S, D), jnp.float32),
        compiler_params=_CPARAMS,
    )(input_ids, *args)


def blip_base_forward(params, image, input_ids, attention_mask, mode):
    assert mode in ("image", "text", "multimodal"), (
        "mode parameter must be image, text, or multimodal"
    )
    if mode == "image":
        return vit_forward(params["visual"], image)
    if mode == "text":
        return bert_forward(params["text"], input_ids, attention_mask)
    # multimodal
    image_embeds = vit_forward(params["visual"], image)
    # image_atts == ones -> cross-attention additive mask is identically zero (skipped)
    input_ids = input_ids.at[:, 0].set(ENC_TOKEN_ID)
    return bert_forward(params["text"], input_ids, attention_mask,
                        enc_hidden=image_embeds)


# ----------------------------- parameter init --------------------------------
def make_params(key):
    keys = iter(jax.random.split(key, 256))
    nk = lambda: next(keys)

    def dense(din, dout):
        w = (jax.random.normal(nk(), (din, dout), jnp.float32) * 0.02
             ).astype(jnp.bfloat16)
        return w, jnp.zeros((1, dout), jnp.float32)

    def ln(d):
        return jnp.ones((1, d), jnp.float32), jnp.zeros((1, d), jnp.float32)

    def stack(dicts):
        return {k: jnp.stack([d[k] for d in dicts], axis=0) for k in dicts[0]}

    n_patch = (IMG_SIZE // PATCH) ** 2
    cpp = IN_CHANS * PATCH * PATCH

    patch_w, patch_b = dense(cpp, VIS_DIM)
    norm_g, norm_b = ln(VIS_DIM)
    vis = dict(
        patch_w=patch_w, patch_b=patch_b,
        cls_token=jax.random.normal(nk(), (1, VIS_DIM), jnp.float32) * 0.02,
        pos_embed=jax.random.normal(nk(), (n_patch + 1, VIS_DIM), jnp.float32) * 0.02,
        norm_g=norm_g, norm_b=norm_b,
    )

    def vit_block():
        d = {}
        d["ln1_g"], d["ln1_b"] = ln(VIS_DIM)
        d["qkv_w"], d["qkv_b"] = dense(VIS_DIM, 3 * VIS_DIM)
        d["o_w"], d["o_b"] = dense(VIS_DIM, VIS_DIM)       # 2-D output projection
        d["ln2_g"], d["ln2_b"] = ln(VIS_DIM)
        d["fc1_w"], d["fc1_b"] = dense(VIS_DIM, MLP_RATIO * VIS_DIM)
        d["fc2_w"], d["fc2_b"] = dense(MLP_RATIO * VIS_DIM, VIS_DIM)
        return d

    vis.update(stack([vit_block() for _ in range(VIS_DEPTH)]))

    emb_ln_g, emb_ln_b = ln(TXT_DIM)
    txt = dict(
        word_emb=jax.random.normal(nk(), (VOCAB, TXT_DIM), jnp.float32) * 0.02,
        pos_emb=jax.random.normal(nk(), (MAX_POS, TXT_DIM), jnp.float32) * 0.02,
        type_emb=jax.random.normal(nk(), (2, TXT_DIM), jnp.float32) * 0.02,
        emb_ln_g=emb_ln_g, emb_ln_b=emb_ln_b,
    )

    def bert_layer():
        d = {}
        d["qkv_w"], d["qkv_b"] = dense(TXT_DIM, 3 * TXT_DIM)
        d["so_w"], d["so_b"] = dense(TXT_DIM, TXT_DIM)
        d["sln_g"], d["sln_b"] = ln(TXT_DIM)
        d["cq_w"], d["cq_b"] = dense(TXT_DIM, TXT_DIM)
        d["ckv_w"], d["ckv_b"] = dense(VIS_DIM, 2 * TXT_DIM)
        d["co_w"], d["co_b"] = dense(TXT_DIM, TXT_DIM)
        d["cln_g"], d["cln_b"] = ln(TXT_DIM)
        d["inter_w"], d["inter_b"] = dense(TXT_DIM, MLP_RATIO * TXT_DIM)
        d["out_w"], d["out_b"] = dense(MLP_RATIO * TXT_DIM, TXT_DIM)
        d["oln_g"], d["oln_b"] = ln(TXT_DIM)
        return d

    txt.update(stack([bert_layer() for _ in range(TXT_DEPTH)]))
    return dict(visual=vis, text=txt)


# ---------------------------------- main --------------------------------------
if __name__ == "__main__":
    key = jax.random.PRNGKey(0)
    k_param, k_img, k_txt = jax.random.split(key, 3)

    params = make_params(k_param)
    image = jax.random.normal(k_img, (2, IN_CHANS, IMG_SIZE, IMG_SIZE), jnp.float32)
    input_ids = jax.random.randint(k_txt, (2, 8), 2, VOCAB).astype(jnp.int32)
    input_ids = input_ids.at[:, 0].set(CLS_TOKEN_ID)
    attention_mask = jnp.ones((2, 8), jnp.int32)

    forward = jax.jit(blip_base_forward, static_argnames=("mode",))

    n_tokens = (IMG_SIZE // PATCH) ** 2 + 1

    img_out = forward(params, image, input_ids, attention_mask, mode="image")
    txt_out = forward(params, image, input_ids, attention_mask, mode="text")
    mm_out = forward(params, image, input_ids, attention_mask, mode="multimodal")
    jax.block_until_ready((img_out, txt_out, mm_out))

    assert img_out.shape == (2, n_tokens, VIS_DIM)
    assert txt_out.shape == (2, 8, TXT_DIM)
    assert mm_out.shape == (2, 8, TXT_DIM)
    assert img_out.dtype == jnp.float32
    assert txt_out.dtype == jnp.float32
    assert mm_out.dtype == jnp.float32
    assert bool(jnp.all(jnp.isfinite(img_out)))
    assert bool(jnp.all(jnp.isfinite(txt_out)))
    assert bool(jnp.all(jnp.isfinite(mm_out)))

    print("KERNEL_OK")
</pallas_src>

<mosaic_0001>
module attributes {stable_mosaic.version = 11 : i64} {
  func.func @_vit_kernel(%arg0: i32, %arg1: memref<1x4x192xbf16, #tpu.memory_space<vmem>>, %arg2: memref<192x32xbf16, #tpu.memory_space<vmem>>, %arg3: memref<1x32xf32, #tpu.memory_space<vmem>>, %arg4: memref<1x32xf32, #tpu.memory_space<vmem>>, %arg5: memref<5x32xf32, #tpu.memory_space<vmem>>, %arg6: memref<2x1x32xf32, #tpu.memory_space<vmem>>, %arg7: memref<2x1x32xf32, #tpu.memory_space<vmem>>, %arg8: memref<2x32x96xbf16, #tpu.memory_space<vmem>>, %arg9: memref<2x1x96xf32, #tpu.memory_space<vmem>>, %arg10: memref<2x32x32xbf16, #tpu.memory_space<vmem>>, %arg11: memref<2x1x32xf32, #tpu.memory_space<vmem>>, %arg12: memref<2x1x32xf32, #tpu.memory_space<vmem>>, %arg13: memref<2x1x32xf32, #tpu.memory_space<vmem>>, %arg14: memref<2x32x128xbf16, #tpu.memory_space<vmem>>, %arg15: memref<2x1x128xf32, #tpu.memory_space<vmem>>, %arg16: memref<2x128x32xbf16, #tpu.memory_space<vmem>>, %arg17: memref<2x1x32xf32, #tpu.memory_space<vmem>>, %arg18: memref<1x32xf32, #tpu.memory_space<vmem>>, %arg19: memref<1x32xf32, #tpu.memory_space<vmem>>, %arg20: memref<1x5x32xf32, #tpu.memory_space<vmem>>, %arg21: memref<5x32xf32, #tpu.memory_space<vmem>>, %arg22: memref<5x32xf32, #tpu.memory_space<vmem>>) attributes {dimension_semantics = [#tpu.dimension_semantics<parallel>], iteration_bounds = array<i64: 2>, scalar_prefetch = 0 : i64, scratch_operands = 2 : i64, tpu.core_type = #tpu.core_type<tc>, window_params = [{transform_indices = @transform_0, window_bounds = array<i64: 1, 4, 192>}, {pipeline_mode = #tpu.pipeline_mode<synchronous>, transform_indices = @transform_1, window_bounds = array<i64: 192, 32>}, {pipeline_mode = #tpu.pipeline_mode<synchronous>, transform_indices = @transform_2, window_bounds = array<i64: 1, 32>}, {pipeline_mode = #tpu.pipeline_mode<synchronous>, transform_indices = @transform_3, window_bounds = array<i64: 1, 32>}, {pipeline_mode = #tpu.pipeline_mode<synchronous>, transform_indices = @transform_4, window_bounds = array<i64: 5, 32>}, {pipeline_mode = #tpu.pipeline_mode<synchronous>, transform_indices = @transform_5, window_bounds = array<i64: 2, 1, 32>}, {pipeline_mode = #tpu.pipeline_mode<synchronous>, transform_indices = @transform_6, window_bounds = array<i64: 2, 1, 32>}, {pipeline_mode = #tpu.pipeline_mode<synchronous>, transform_indices = @transform_7, window_bounds = array<i64: 2, 32, 96>}, {pipeline_mode = #tpu.pipeline_mode<synchronous>, transform_indices = @transform_8, window_bounds = array<i64: 2, 1, 96>}, {pipeline_mode = #tpu.pipeline_mode<synchronous>, transform_indices = @transform_9, window_bounds = array<i64: 2, 32, 32>}, {pipeline_mode = #tpu.pipeline_mode<synchronous>, transform_indices = @transform_10, window_bounds = array<i64: 2, 1, 32>}, {pipeline_mode = #tpu.pipeline_mode<synchronous>, transform_indices = @transform_11, window_bounds = array<i64: 2, 1, 32>}, {pipeline_mode = #tpu.pipeline_mode<synchronous>, transform_indices = @transform_12, window_bounds = array<i64: 2, 1, 32>}, {pipeline_mode = #tpu.pipeline_mode<synchronous>, transform_indices = @transform_13, window_bounds = array<i64: 2, 32, 128>}, {pipeline_mode = #tpu.pipeline_mode<synchronous>, transform_indices = @transform_14, window_bounds = array<i64: 2, 1, 128>}, {pipeline_mode = #tpu.pipeline_mode<synchronous>, transform_indices = @transform_15, window_bounds = array<i64: 2, 128, 32>}, {pipeline_mode = #tpu.pipeline_mode<synchronous>, transform_indices = @transform_16, window_bounds = array<i64: 2, 1, 32>}, {pipeline_mode = #tpu.pipeline_mode<synchronous>, transform_indices = @transform_17, window_bounds = array<i64: 1, 32>}, {pipeline_mode = #tpu.pipeline_mode<synchronous>, transform_indices = @transform_18, window_bounds = array<i64: 1, 32>}, {transform_indices = @transform_19, window_bounds = array<i64: 1, 5, 32>}]} {
    %c0 = arith.constant 0 : index
    %c0_0 = arith.constant 0 : index
    %c0_1 = arith.constant 0 : index
    %0 = vector.load %arg1[%c0, %c0_0, %c0_1] : memref<1x4x192xbf16, #tpu.memory_space<vmem>>, vector<1x4x192xbf16>
    %1 = vector.shape_cast %0 : vector<1x4x192xbf16> to vector<4x192xbf16>
    %c0_2 = arith.constant 0 : index
    %c0_3 = arith.constant 0 : index
    %2 = vector.load %arg2[%c0_2, %c0_3] : memref<192x32xbf16, #tpu.memory_space<vmem>>, vector<192x32xbf16>
    %cst = arith.constant dense<0.000000e+00> : vector<4x32xf32>
    %3 = tpu.matmul %1, %2, %cst {dimension_numbers = #tpu.dot_dimension_numbers<[1], [0], [0], [1], [0, 0, 1, 1], [], []>} : vector<4x192xbf16>, vector<192x32xbf16>, vector<4x32xf32> -> vector<4x32xf32>
    %c0_4 = arith.constant 0 : index
    %c0_5 = arith.constant 0 : index
    %4 = vector.load %arg3[%c0_4, %c0_5] : memref<1x32xf32, #tpu.memory_space<vmem>>, vector<1x32xf32>
    %5 = vector.broadcast %4 : vector<1x32xf32> to vector<4x32xf32>
    %6 = arith.addf %3, %5 : vector<4x32xf32>
    %c1 = arith.constant 1 : index
    %c0_6 = arith.constant 0 : index
    %7 = vector.load %arg5[%c1, %c0_6] : memref<5x32xf32, #tpu.memory_space<vmem>>, vector<4x32xf32>
    %8 = arith.addf %6, %7 : vector<4x32xf32>
    %c1_7 = arith.constant 1 : index
    %c0_8 = arith.constant 0 : index
    %9 = vector.load %arg21[%c1_7, %c0_8] : memref<5x32xf32, #tpu.memory_space<vmem>>, vector<4x32xf32>
    tpu.vector_store %arg21[%c1_7, %c0_8], %8 {strides = array<i32>} : memref<5x32xf32, #tpu.memory_space<vmem>>, vector<4x32xf32>,
    %c0_9 = arith.constant 0 : index
    %c0_10 = arith.constant 0 : index
    %10 = vector.load %arg4[%c0_9, %c0_10] : memref<1x32xf32, #tpu.memory_space<vmem>>, vector<1x32xf32>
    %c0_11 = arith.constant 0 : index
    %c0_12 = arith.constant 0 : index
    %11 = vector.load %arg5[%c0_11, %c0_12] : memref<5x32xf32, #tpu.memory_space<vmem>>, vector<1x32xf32>
    %12 = arith.addf %10, %11 : vector<1x32xf32>
    %c0_13 = arith.constant 0 : index
    %c0_14 = arith.constant 0 : index
    %13 = vector.load %arg21[%c0_13, %c0_14] : memref<5x32xf32, #tpu.memory_space<vmem>>, vector<1x32xf32>
    tpu.vector_store %arg21[%c0_13, %c0_14], %12 {strides = array<i32>} : memref<5x32xf32, #tpu.memory_space<vmem>>, vector<1x32xf32>,
    %c0_15 = arith.constant 0 : index
    %c0_16 = arith.constant 0 : index
    %14 = vector.load %arg21[%c0_15, %c0_16] : memref<5x32xf32, #tpu.memory_space<vmem>>, vector<5x32xf32>
    %c0_17 = arith.constant 0 : index
    %c0_18 = arith.constant 0 : index
    %c0_19 = arith.constant 0 : index
    %15 = vector.load %arg6[%c0_17, %c0_18, %c0_19] : memref<2x1x32xf32, #tpu.memory_space<vmem>>, vector<1x1x32xf32>
    %16 = vector.shape_cast %15 : vector<1x1x32xf32> to vector<1x32xf32>
    %c0_20 = arith.constant 0 : index
    %c0_21 = arith.constant 0 : index
    %c0_22 = arith.constant 0 : index
    %17 = vector.load %arg7[%c0_20, %c0_21, %c0_22] : memref<2x1x32xf32, #tpu.memory_space<vmem>>, vector<1x1x32xf32>
    %18 = vector.shape_cast %17 : vector<1x1x32xf32> to vector<1x32xf32>
    %cst_23 = arith.constant dense<0.000000e+00> : vector<5xf32>
    %19 = vector.multi_reduction <add>, %14, %cst_23 [1] : vector<5x32xf32> to vector<5xf32>
    %20 = vector.shape_cast %19 : vector<5xf32> to vector<5x1xf32>
    %cst_24 = arith.constant 3.200000e+01 : f32
    %21 = vector.broadcast %cst_24 : f32 to vector<5x1xf32>
    %22 = arith.divf %20, %21 : vector<5x1xf32>
    %23 = vector.broadcast %22 : vector<5x1xf32> to vector<5x32xf32>
    %24 = arith.subf %14, %23 : vector<5x32xf32>
    %25 = arith.mulf %24, %24 : vector<5x32xf32>
    %cst_25 = arith.constant dense<0.000000e+00> : vector<5xf32>
    %26 = vector.multi_reduction <add>, %25, %cst_25 [1] : vector<5x32xf32> to vector<5xf32>
    %27 = vector.shape_cast %26 : vector<5xf32> to vector<5x1xf32>
    %cst_26 = arith.constant 3.200000e+01 : f32
    %28 = vector.broadcast %cst_26 : f32 to vector<5x1xf32>
    %29 = arith.divf %27, %28 : vector<5x1xf32>
    %30 = vector.broadcast %22 : vector<5x1xf32> to vector<5x32xf32>
    %31 = arith.subf %14, %30 : vector<5x32xf32>
    %cst_27 = arith.constant 9.99999997E-7 : f32
    %32 = vector.broadcast %cst_27 : f32 to vector<5x1xf32>
    %33 = arith.addf %29, %32 : vector<5x1xf32>
    %34 = math.rsqrt %33 : vector<5x1xf32>
    %35 = vector.broadcast %34 : vector<5x1xf32> to vector<5x32xf32>
    %36 = arith.mulf %31, %35 : vector<5x32xf32>
    %37 = vector.broadcast %16 : vector<1x32xf32> to vector<5x32xf32>
    %38 = arith.mulf %36, %37 : vector<5x32xf32>
    %39 = vector.broadcast %18 : vector<1x32xf32> to vector<5x32xf32>
    %40 = arith.addf %38, %39 : vector<5x32xf32>
    %c0_28 = arith.constant 0 : index
    %c0_29 = arith.constant 0 : index
    %c0_30 = arith.constant 0 : index
    %41 = vector.load %arg8[%c0_28, %c0_29, %c0_30] : memref<2x32x96xbf16, #tpu.memory_space<vmem>>, vector<1x32x96xbf16>
    %42 = vector.shape_cast %41 : vector<1x32x96xbf16> to vector<32x96xbf16>
    %c0_31 = arith.constant 0 : index
    %c0_32 = arith.constant 0 : index
    %c0_33 = arith.constant 0 : index
    %43 = vector.load %arg9[%c0_31, %c0_32, %c0_33] : memref<2x1x96xf32, #tpu.memory_space<vmem>>, vector<1x1x96xf32>
    %44 = vector.shape_cast %43 : vector<1x1x96xf32> to vector<1x96xf32>
    %c0_34 = arith.constant 0 : index
    %c0_35 = arith.constant 0 : index
    %c0_36 = arith.constant 0 : index
    %45 = vector.load %arg10[%c0_34, %c0_35, %c0_36] : memref<2x32x32xbf16, #tpu.memory_space<vmem>>, vector<1x32x32xbf16>
    %46 = vector.shape_cast %45 : vector<1x32x32xbf16> to vector<32x32xbf16>
    %47 = arith.truncf %40 : vector<5x32xf32> to vector<5x32xbf16>
    %cst_37 = arith.constant dense<0.000000e+00> : vector<5x96xf32>
    %48 = tpu.matmul %47, %42, %cst_37 {dimension_numbers = #tpu.dot_dimension_numbers<[1], [0], [0], [1], [0, 0, 1, 1], [], []>} : vector<5x32xbf16>, vector<32x96xbf16>, vector<5x96xf32> -> vector<5x96xf32>
    %49 = vector.broadcast %44 : vector<1x96xf32> to vector<5x96xf32>
    %50 = arith.addf %48, %49 : vector<5x96xf32>
    %51 = arith.truncf %50 : vector<5x96xf32> to vector<5x96xbf16>
    %52 = vector.extract_strided_slice %51 {offsets = [0, 0], sizes = [5, 32], strides = [1, 1]} : vector<5x96xbf16> to vector<5x32xbf16>
    %53 = vector.extract_strided_slice %51 {offsets = [0, 32], sizes = [5, 32], strides = [1, 1]} : vector<5x96xbf16> to vector<5x32xbf16>
    %54 = vector.extract_strided_slice %51 {offsets = [0, 64], sizes = [5, 32], strides = [1, 1]} : vector<5x96xbf16> to vector<5x32xbf16>
    %55 = vector.extract_strided_slice %52 {offsets = [0, 0], sizes = [5, 8], strides = [1, 1]} : vector<5x32xbf16> to vector<5x8xbf16>
    %56 = vector.extract_strided_slice %53 {offsets = [0, 0], sizes = [5, 8], strides = [1, 1]} : vector<5x32xbf16> to vector<5x8xbf16>
    %cst_38 = arith.constant dense<0.000000e+00> : vector<5x5xf32>
    %57 = tpu.matmul %55, %56, %cst_38 {dimension_numbers = #tpu.dot_dimension_numbers<[1], [1], [0], [0], [0, 0, 1, 0], [], []>} : vector<5x8xbf16>, vector<5x8xbf16>, vector<5x5xf32> -> vector<5x5xf32>
    %cst_39 = arith.constant 0.353553385 : f32
    %58 = vector.broadcast %cst_39 : f32 to vector<5x5xf32>
    %59 = arith.mulf %57, %58 : vector<5x5xf32>
    %cst_40 = arith.constant dense<0xFF800000> : vector<5xf32>
    %60 = vector.multi_reduction <maximumf>, %59, %cst_40 [1] : vector<5x5xf32> to vector<5xf32>
    %61 = vector.shape_cast %60 : vector<5xf32> to vector<5x1xf32>
    %62 = vector.broadcast %61 : vector<5x1xf32> to vector<5x5xf32>
    %63 = arith.subf %59, %62 : vector<5x5xf32>
    %64 = math.exp %63 : vector<5x5xf32>
    %cst_41 = arith.constant dense<0.000000e+00> : vector<5xf32>
    %65 = vector.multi_reduction <add>, %64, %cst_41 [1] : vector<5x5xf32> to vector<5xf32>
    %66 = vector.shape_cast %65 : vector<5xf32> to vector<5x1xf32>
    %67 = tpu.reciprocal %66 {approx = true} : vector<5x1xf32> -> vector<5x1xf32>
    %68 = vector.broadcast %67 : vector<5x1xf32> to vector<5x5xf32>
    %69 = arith.mulf %64, %68 : vector<5x5xf32>
    %70 = arith.truncf %69 : vector<5x5xf32> to vector<5x5xbf16>
    %71 = vector.extract_strided_slice %54 {offsets = [0, 0], sizes = [5, 8], strides = [1, 1]} : vector<5x32xbf16> to vector<5x8xbf16>
    %cst_42 = arith.constant dense<0.000000e+00> : vector<5x8xf32>
    %72 = tpu.matmul %70, %71, %cst_42 {dimension_numbers = #tpu.dot_dimension_numbers<[1], [0], [0], [1], [0, 0, 1, 1], [], []>} : vector<5x5xbf16>, vector<5x8xbf16>, vector<5x8xf32> -> vector<5x8xf32>
    %c0_43 = arith.constant 0 : index
    %c0_44 = arith.constant 0 : index
    %73 = vector.load %arg22[%c0_43, %c0_44] : memref<5x32xf32, #tpu.memory_space<vmem>>, vector<5x8xf32>
    tpu.vector_store %arg22[%c0_43, %c0_44], %72 {strides = array<i32>} : memref<5x32xf32, #tpu.memory_space<vmem>>, vector<5x8xf32>,
    %74 = vector.extract_strided_slice %52 {offsets = [0, 8], sizes = [5, 8], strides = [1, 1]} : vector<5x32xbf16> to vector<5x8xbf16>
    %75 = vector.extract_strided_slice %53 {offsets = [0, 8], sizes = [5, 8], strides = [1, 1]} : vector<5x32xbf16> to vector<5x8xbf16>
    %cst_45 = arith.constant dense<0.000000e+00> : vector<5x5xf32>
    %76 = tpu.matmul %74, %75, %cst_45 {dimension_numbers = #tpu.dot_dimension_numbers<[1], [1], [0], [0], [0, 0, 1, 0], [], []>} : vector<5x8xbf16>, vector<5x8xbf16>, vector<5x5xf32> -> vector<5x5xf32>
    %cst_46 = arith.constant 0.353553385 : f32
    %77 = vector.broadcast %cst_46 : f32 to vector<5x5xf32>
    %78 = arith.mulf %76, %77 : vector<5x5xf32>
    %cst_47 = arith.constant dense<0xFF800000> : vector<5xf32>
    %79 = vector.multi_reduction <maximumf>, %78, %cst_47 [1] : vector<5x5xf32> to vector<5xf32>
    %80 = vector.shape_cast %79 : vector<5xf32> to vector<5x1xf32>
    %81 = vector.broadcast %80 : vector<5x1xf32> to vector<5x5xf32>
    %82 = arith.subf %78, %81 : vector<5x5xf32>
    %83 = math.exp %82 : vector<5x5xf32>
    %cst_48 = arith.constant dense<0.000000e+00> : vector<5xf32>
    %84 = vector.multi_reduction <add>, %83, %cst_48 [1] : vector<5x5xf32> to vector<5xf32>
    %85 = vector.shape_cast %84 : vector<5xf32> to vector<5x1xf32>
    %86 = tpu.reciprocal %85 {approx = true} : vector<5x1xf32> -> vector<5x1xf32>
    %87 = vector.broadcast %86 : vector<5x1xf32> to vector<5x5xf32>
    %88 = arith.mulf %83, %87 : vector<5x5xf32>
    %89 = arith.truncf %88 : vector<5x5xf32> to vector<5x5xbf16>
    %90 = vector.extract_strided_slice %54 {offsets = [0, 8], sizes = [5, 8], strides = [1, 1]} : vector<5x32xbf16> to vector<5x8xbf16>
    %cst_49 = arith.constant dense<0.000000e+00> : vector<5x8xf32>
    %91 = tpu.matmul %89, %90, %cst_49 {dimension_numbers = #tpu.dot_dimension_numbers<[1], [0], [0], [1], [0, 0, 1, 1], [], []>} : vector<5x5xbf16>, vector<5x8xbf16>, vector<5x8xf32> -> vector<5x8xf32>
    %c0_50 = arith.constant 0 : index
    %c8 = arith.constant 8 : index
    %92 = vector.load %arg22[%c0_50, %c8] : memref<5x32xf32, #tpu.memory_space<vmem>>, vector<5x8xf32>
    tpu.vector_store %arg22[%c0_50, %c8], %91 {strides = array<i32>} : memref<5x32xf32, #tpu.memory_space<vmem>>, vector<5x8xf32>,
    %93 = vector.extract_strided_slice %52 {offsets = [0, 16], sizes = [5, 8], strides = [1, 1]} : vector<5x32xbf16> to vector<5x8xbf16>
    %94 = vector.extract_strided_slice %53 {offsets = [0, 16], sizes = [5, 8], strides = [1, 1]} : vector<5x32xbf16> to vector<5x8xbf16>
    %cst_51 = arith.constant dense<0.000000e+00> : vector<5x5xf32>
    %95 = tpu.matmul %93, %94, %cst_51 {dimension_numbers = #tpu.dot_dimension_numbers<[1], [1], [0], [0], [0, 0, 1, 0], [], []>} : vector<5x8xbf16>, vector<5x8xbf16>, vector<5x5xf32> -> vector<5x5xf32>
    %cst_52 = arith.constant 0.353553385 : f32
    %96 = vector.broadcast %cst_52 : f32 to vector<5x5xf32>
    %97 = arith.mulf %95, %96 : vector<5x5xf32>
    %cst_53 = arith.constant dense<0xFF800000> : vector<5xf32>
    %98 = vector.multi_reduction <maximumf>, %97, %cst_53 [1] : vector<5x5xf32> to vector<5xf32>
    %99 = vector.shape_cast %98 : vector<5xf32> to vector<5x1xf32>
    %100 = vector.broadcast %99 : vector<5x1xf32> to vector<5x5xf32>
    %101 = arith.subf %97, %100 : vector<5x5xf32>
    %102 = math.exp %101 : vector<5x5xf32>
    %cst_54 = arith.constant dense<0.000000e+00> : vector<5xf32>
    %103 = vector.multi_reduction <add>, %102, %cst_54 [1] : vector<5x5xf32> to vector<5xf32>
    %104 = vector.shape_cast %103 : vector<5xf32> to vector<5x1xf32>
    %105 = tpu.reciprocal %104 {approx = true} : vector<5x1xf32> -> vector<5x1xf32>
    %106 = vector.broadcast %105 : vector<5x1xf32> to vector<5x5xf32>
    %107 = arith.mulf %102, %106 : vector<5x5xf32>
    %108 = arith.truncf %107 : vector<5x5xf32> to vector<5x5xbf16>
    %109 = vector.extract_strided_slice %54 {offsets = [0, 16], sizes = [5, 8], strides = [1, 1]} : vector<5x32xbf16> to vector<5x8xbf16>
    %cst_55 = arith.constant dense<0.000000e+00> : vector<5x8xf32>
    %110 = tpu.matmul %108, %109, %cst_55 {dimension_numbers = #tpu.dot_dimension_numbers<[1], [0], [0], [1], [0, 0, 1, 1], [], []>} : vector<5x5xbf16>, vector<5x8xbf16>, vector<5x8xf32> -> vector<5x8xf32>
    %c0_56 = arith.constant 0 : index
    %c16 = arith.constant 16 : index
    %111 = vector.load %arg22[%c0_56, %c16] : memref<5x32xf32, #tpu.memory_space<vmem>>, vector<5x8xf32>
    tpu.vector_store %arg22[%c0_56, %c16], %110 {strides = array<i32>} : memref<5x32xf32, #tpu.memory_space<vmem>>, vector<5x8xf32>,
    %112 = vector.extract_strided_slice %52 {offsets = [0, 24], sizes = [5, 8], strides = [1, 1]} : vector<5x32xbf16> to vector<5x8xbf16>
    %113 = vector.extract_strided_slice %53 {offsets = [0, 24], sizes = [5, 8], strides = [1, 1]} : vector<5x32xbf16> to vector<5x8xbf16>
    %cst_57 = arith.constant dense<0.000000e+00> : vector<5x5xf32>
    %114 = tpu.matmul %112, %113, %cst_57 {dimension_numbers = #tpu.dot_dimension_numbers<[1], [1], [0], [0], [0, 0, 1, 0], [], []>} : vector<5x8xbf16>, vector<5x8xbf16>, vector<5x5xf32> -> vector<5x5xf32>
    %cst_58 = arith.constant 0.353553385 : f32
    %115 = vector.broadcast %cst_58 : f32 to vector<5x5xf32>
    %116 = arith.mulf %114, %115 : vector<5x5xf32>
    %cst_59 = arith.constant dense<0xFF800000> : vector<5xf32>
    %117 = vector.multi_reduction <maximumf>, %116, %cst_59 [1] : vector<5x5xf32> to vector<5xf32>
    %118 = vector.shape_cast %117 : vector<5xf32> to vector<5x1xf32>
    %119 = vector.broadcast %118 : vector<5x1xf32> to vector<5x5xf32>
    %120 = arith.subf %116, %119 : vector<5x5xf32>
    %121 = math.exp %120 : vector<5x5xf32>
    %cst_60 = arith.constant dense<0.000000e+00> : vector<5xf32>
    %122 = vector.multi_reduction <add>, %121, %cst_60 [1] : vector<5x5xf32> to vector<5xf32>
    %123 = vector.shape_cast %122 : vector<5xf32> to vector<5x1xf32>
    %124 = tpu.reciprocal %123 {approx = true} : vector<5x1xf32> -> vector<5x1xf32>
    %125 = vector.broadcast %124 : vector<5x1xf32> to vector<5x5xf32>
    %126 = arith.mulf %121, %125 : vector<5x5xf32>
    %127 = arith.truncf %126 : vector<5x5xf32> to vector<5x5xbf16>
    %128 = vector.extract_strided_slice %54 {offsets = [0, 24], sizes = [5, 8], strides = [1, 1]} : vector<5x32xbf16> to vector<5x8xbf16>
    %cst_61 = arith.constant dense<0.000000e+00> : vector<5x8xf32>
    %129 = tpu.matmul %127, %128, %cst_61 {dimension_numbers = #tpu.dot_dimension_numbers<[1], [0], [0], [1], [0, 0, 1, 1], [], []>} : vector<5x5xbf16>, vector<5x8xbf16>, vector<5x8xf32> -> vector<5x8xf32>
    %c0_62 = arith.constant 0 : index
    %c24 = arith.constant 24 : index
    %130 = vector.load %arg22[%c0_62, %c24] : memref<5x32xf32, #tpu.memory_space<vmem>>, vector<5x8xf32>
    tpu.vector_store %arg22[%c0_62, %c24], %129 {strides = array<i32>} : memref<5x32xf32, #tpu.memory_space<vmem>>, vector<5x8xf32>,
    %c0_63 = arith.constant 0 : index
    %c0_64 = arith.constant 0 : index
    %131 = vector.load %arg22[%c0_63, %c0_64] : memref<5x32xf32, #tpu.memory_space<vmem>>, vector<5x32xf32>
    %132 = arith.truncf %131 : vector<5x32xf32> to vector<5x32xbf16>
    %cst_65 = arith.constant dense<0.000000e+00> : vector<5x32xf32>
    %133 = tpu.matmul %132, %46, %cst_65 {dimension_numbers = #tpu.dot_dimension_numbers<[1], [0], [0], [1], [0, 0, 1, 1], [], []>} : vector<5x32xbf16>, vector<32x32xbf16>, vector<5x32xf32> -> vector<5x32xf32>
    %134 = arith.addf %14, %133 : vector<5x32xf32>
    %c0_66 = arith.constant 0 : index
    %c0_67 = arith.constant 0 : index
    %c0_68 = arith.constant 0 : index
    %135 = vector.load %arg11[%c0_66, %c0_67, %c0_68] : memref<2x1x32xf32, #tpu.memory_space<vmem>>, vector<1x1x32xf32>
    %136 = vector.shape_cast %135 : vector<1x1x32xf32> to vector<1x32xf32>
    %137 = vector.broadcast %136 : vector<1x32xf32> to vector<5x32xf32>
    %138 = arith.addf %134, %137 : vector<5x32xf32>
    %c0_69 = arith.constant 0 : index
    %c0_70 = arith.constant 0 : index
    %c0_71 = arith.constant 0 : index
    %139 = vector.load %arg12[%c0_69, %c0_70, %c0_71] : memref<2x1x32xf32, #tpu.memory_space<vmem>>, vector<1x1x32xf32>
    %140 = vector.shape_cast %139 : vector<1x1x32xf32> to vector<1x32xf32>
    %c0_72 = arith.constant 0 : index
    %c0_73 = arith.constant 0 : index
    %c0_74 = arith.constant 0 : index
    %141 = vector.load %arg13[%c0_72, %c0_73, %c0_74] : memref<2x1x32xf32, #tpu.memory_space<vmem>>, vector<1x1x32xf32>
    %142 = vector.shape_cast %141 : vector<1x1x32xf32> to vector<1x32xf32>
    %cst_75 = arith.constant dense<0.000000e+00> : vector<5xf32>
    %143 = vector.multi_reduction <add>, %138, %cst_75 [1] : vector<5x32xf32> to vector<5xf32>
    %144 = vector.shape_cast %143 : vector<5xf32> to vector<5x1xf32>
    %cst_76 = arith.constant 3.200000e+01 : f32
    %145 = vector.broadcast %cst_76 : f32 to vector<5x1xf32>
    %146 = arith.divf %144, %145 : vector<5x1xf32>
    %147 = vector.broadcast %146 : vector<5x1xf32> to vector<5x32xf32>
    %148 = arith.subf %138, %147 : vector<5x32xf32>
    %149 = arith.mulf %148, %148 : vector<5x32xf32>
    %cst_77 = arith.constant dense<0.000000e+00> : vector<5xf32>
    %150 = vector.multi_reduction <add>, %149, %cst_77 [1] : vector<5x32xf32> to vector<5xf32>
    %151 = vector.shape_cast %150 : vector<5xf32> to vector<5x1xf32>
    %cst_78 = arith.constant 3.200000e+01 : f32
    %152 = vector.broadcast %cst_78 : f32 to vector<5x1xf32>
    %153 = arith.divf %151, %152 : vector<5x1xf32>
    %154 = vector.broadcast %146 : vector<5x1xf32> to vector<5x32xf32>
    %155 = arith.subf %138, %154 : vector<5x32xf32>
    %cst_79 = arith.constant 9.99999997E-7 : f32
    %156 = vector.broadcast %cst_79 : f32 to vector<5x1xf32>
    %157 = arith.addf %153, %156 : vector<5x1xf32>
    %158 = math.rsqrt %157 : vector<5x1xf32>
    %159 = vector.broadcast %158 : vector<5x1xf32> to vector<5x32xf32>
    %160 = arith.mulf %155, %159 : vector<5x32xf32>
    %161 = vector.broadcast %140 : vector<1x32xf32> to vector<5x32xf32>
    %162 = arith.mulf %160, %161 : vector<5x32xf32>
    %163 = vector.broadcast %142 : vector<1x32xf32> to vector<5x32xf32>
    %164 = arith.addf %162, %163 : vector<5x32xf32>
    %c0_80 = arith.constant 0 : index
    %c0_81 = arith.constant 0 : index
    %c0_82 = arith.constant 0 : index
    %165 = vector.load %arg14[%c0_80, %c0_81, %c0_82] : memref<2x32x128xbf16, #tpu.memory_space<vmem>>, vector<1x32x128xbf16>
    %166 = vector.shape_cast %165 : vector<1x32x128xbf16> to vector<32x128xbf16>
    %c0_83 = arith.constant 0 : index
    %c0_84 = arith.constant 0 : index
    %c0_85 = arith.constant 0 : index
    %167 = vector.load %arg15[%c0_83, %c0_84, %c0_85] : memref<2x1x128xf32, #tpu.memory_space<vmem>>, vector<1x1x128xf32>
    %168 = vector.shape_cast %167 : vector<1x1x128xf32> to vector<1x128xf32>
    %c0_86 = arith.constant 0 : index
    %c0_87 = arith.constant 0 : index
    %c0_88 = arith.constant 0 : index
    %169 = vector.load %arg16[%c0_86, %c0_87, %c0_88] : memref<2x128x32xbf16, #tpu.memory_space<vmem>>, vector<1x128x32xbf16>
    %170 = vector.shape_cast %169 : vector<1x128x32xbf16> to vector<128x32xbf16>
    %c0_89 = arith.constant 0 : index
    %c0_90 = arith.constant 0 : index
    %c0_91 = arith.constant 0 : index
    %171 = vector.load %arg17[%c0_89, %c0_90, %c0_91] : memref<2x1x32xf32, #tpu.memory_space<vmem>>, vector<1x1x32xf32>
    %172 = vector.shape_cast %171 : vector<1x1x32xf32> to vector<1x32xf32>
    %173 = arith.truncf %164 : vector<5x32xf32> to vector<5x32xbf16>
    %cst_92 = arith.constant dense<0.000000e+00> : vector<5x128xf32>
    %174 = tpu.matmul %173, %166, %cst_92 {dimension_numbers = #tpu.dot_dimension_numbers<[1], [0], [0], [1], [0, 0, 1, 1], [], []>} : vector<5x32xbf16>, vector<32x128xbf16>, vector<5x128xf32> -> vector<5x128xf32>
    %175 = vector.broadcast %168 : vector<1x128xf32> to vector<5x128xf32>
    %176 = arith.addf %174, %175 : vector<5x128xf32>
    %cst_93 = arith.constant 5.000000e-01 : f32
    %177 = vector.broadcast %cst_93 : f32 to vector<5x128xf32>
    %178 = arith.mulf %177, %176 : vector<5x128xf32>
    %cst_94 = arith.constant 4.471500e-02 : f32
    %179 = vector.broadcast %cst_94 : f32 to vector<5x128xf32>
    %180 = arith.mulf %179, %176 : vector<5x128xf32>
    %181 = arith.mulf %180, %176 : vector<5x128xf32>
    %182 = arith.mulf %181, %176 : vector<5x128xf32>
    %183 = arith.addf %176, %182 : vector<5x128xf32>
    %cst_95 = arith.constant 0.797884583 : f32
    %184 = vector.broadcast %cst_95 : f32 to vector<5x128xf32>
    %185 = arith.mulf %184, %183 : vector<5x128xf32>
    %186 = math.tanh %185 : vector<5x128xf32>
    %cst_96 = arith.constant 1.000000e+00 : f32
    %187 = vector.broadcast %cst_96 : f32 to vector<5x128xf32>
    %188 = arith.addf %187, %186 : vector<5x128xf32>
    %189 = arith.mulf %178, %188 : vector<5x128xf32>
    %190 = arith.truncf %189 : vector<5x128xf32> to vector<5x128xbf16>
    %cst_97 = arith.constant dense<0.000000e+00> : vector<5x32xf32>
    %191 = tpu.matmul %190, %170, %cst_97 {dimension_numbers = #tpu.dot_dimension_numbers<[1], [0], [0], [1], [0, 0, 1, 1], [], []>} : vector<5x128xbf16>, vector<128x32xbf16>, vector<5x32xf32> -> vector<5x32xf32>
    %192 = vector.broadcast %172 : vector<1x32xf32> to vector<5x32xf32>
    %193 = arith.addf %191, %192 : vector<5x32xf32>
    %194 = arith.addf %138, %193 : vector<5x32xf32>
    %c1_98 = arith.constant 1 : index
    %c0_99 = arith.constant 0 : index
    %c0_100 = arith.constant 0 : index
    %195 = vector.load %arg6[%c1_98, %c0_99, %c0_100] : memref<2x1x32xf32, #tpu.memory_space<vmem>>, vector<1x1x32xf32>
    %196 = vector.shape_cast %195 : vector<1x1x32xf32> to vector<1x32xf32>
    %c1_101 = arith.constant 1 : index
    %c0_102 = arith.constant 0 : index
    %c0_103 = arith.constant 0 : index
    %197 = vector.load %arg7[%c1_101, %c0_102, %c0_103] : memref<2x1x32xf32, #tpu.memory_space<vmem>>, vector<1x1x32xf32>
    %198 = vector.shape_cast %197 : vector<1x1x32xf32> to vector<1x32xf32>
    %cst_104 = arith.constant dense<0.000000e+00> : vector<5xf32>
    %199 = vector.multi_reduction <add>, %194, %cst_104 [1] : vector<5x32xf32> to vector<5xf32>
    %200 = vector.shape_cast %199 : vector<5xf32> to vector<5x1xf32>
    %cst_105 = arith.constant 3.200000e+01 : f32
    %201 = vector.broadcast %cst_105 : f32 to vector<5x1xf32>
    %202 = arith.divf %200, %201 : vector<5x1xf32>
    %203 = vector.broadcast %202 : vector<5x1xf32> to vector<5x32xf32>
    %204 = arith.subf %194, %203 : vector<5x32xf32>
    %205 = arith.mulf %204, %204 : vector<5x32xf32>
    %cst_106 = arith.constant dense<0.000000e+00> : vector<5xf32>
    %206 = vector.multi_reduction <add>, %205, %cst_106 [1] : vector<5x32xf32> to vector<5xf32>
    %207 = vector.shape_cast %206 : vector<5xf32> to vector<5x1xf32>
    %cst_107 = arith.constant 3.200000e+01 : f32
    %208 = vector.broadcast %cst_107 : f32 to vector<5x1xf32>
    %209 = arith.divf %207, %208 : vector<5x1xf32>
    %210 = vector.broadcast %202 : vector<5x1xf32> to vector<5x32xf32>
    %211 = arith.subf %194, %210 : vector<5x32xf32>
    %cst_108 = arith.constant 9.99999997E-7 : f32
    %212 = vector.broadcast %cst_108 : f32 to vector<5x1xf32>
    %213 = arith.addf %209, %212 : vector<5x1xf32>
    %214 = math.rsqrt %213 : vector<5x1xf32>
    %215 = vector.broadcast %214 : vector<5x1xf32> to vector<5x32xf32>
    %216 = arith.mulf %211, %215 : vector<5x32xf32>
    %217 = vector.broadcast %196 : vector<1x32xf32> to vector<5x32xf32>
    %218 = arith.mulf %216, %217 : vector<5x32xf32>
    %219 = vector.broadcast %198 : vector<1x32xf32> to vector<5x32xf32>
    %220 = arith.addf %218, %219 : vector<5x32xf32>
    %c1_109 = arith.constant 1 : index
    %c0_110 = arith.constant 0 : index
    %c0_111 = arith.constant 0 : index
    %221 = vector.load %arg8[%c1_109, %c0_110, %c0_111] : memref<2x32x96xbf16, #tpu.memory_space<vmem>>, vector<1x32x96xbf16>
    %222 = vector.shape_cast %221 : vector<1x32x96xbf16> to vector<32x96xbf16>
    %c1_112 = arith.constant 1 : index
    %c0_113 = arith.constant 0 : index
    %c0_114 = arith.constant 0 : index
    %223 = vector.load %arg9[%c1_112, %c0_113, %c0_114] : memref<2x1x96xf32, #tpu.memory_space<vmem>>, vector<1x1x96xf32>
    %224 = vector.shape_cast %223 : vector<1x1x96xf32> to vector<1x96xf32>
    %c1_115 = arith.constant 1 : index
    %c0_116 = arith.constant 0 : index
    %c0_117 = arith.constant 0 : index
    %225 = vector.load %arg10[%c1_115, %c0_116, %c0_117] : memref<2x32x32xbf16, #tpu.memory_space<vmem>>, vector<1x32x32xbf16>
    %226 = vector.shape_cast %225 : vector<1x32x32xbf16> to vector<32x32xbf16>
    %227 = arith.truncf %220 : vector<5x32xf32> to vector<5x32xbf16>
    %cst_118 = arith.constant dense<0.000000e+00> : vector<5x96xf32>
    %228 = tpu.matmul %227, %222, %cst_118 {dimension_numbers = #tpu.dot_dimension_numbers<[1], [0], [0], [1], [0, 0, 1, 1], [], []>} : vector<5x32xbf16>, vector<32x96xbf16>, vector<5x96xf32> -> vector<5x96xf32>
    %229 = vector.broadcast %224 : vector<1x96xf32> to vector<5x96xf32>
    %230 = arith.addf %228, %229 : vector<5x96xf32>
    %231 = arith.truncf %230 : vector<5x96xf32> to vector<5x96xbf16>
    %232 = vector.extract_strided_slice %231 {offsets = [0, 0], sizes = [5, 32], strides = [1, 1]} : vector<5x96xbf16> to vector<5x32xbf16>
    %233 = vector.extract_strided_slice %231 {offsets = [0, 32], sizes = [5, 32], strides = [1, 1]} : vector<5x96xbf16> to vector<5x32xbf16>
    %234 = vector.extract_strided_slice %231 {offsets = [0, 64], sizes = [5, 32], strides = [1, 1]} : vector<5x96xbf16> to vector<5x32xbf16>
    %235 = vector.extract_strided_slice %232 {offsets = [0, 0], sizes = [5, 8], strides = [1, 1]} : vector<5x32xbf16> to vector<5x8xbf16>
    %236 = vector.extract_strided_slice %233 {offsets = [0, 0], sizes = [5, 8], strides = [1, 1]} : vector<5x32xbf16> to vector<5x8xbf16>
    %cst_119 = arith.constant dense<0.000000e+00> : vector<5x5xf32>
    %237 = tpu.matmul %235, %236, %cst_119 {dimension_numbers = #tpu.dot_dimension_numbers<[1], [1], [0], [0], [0, 0, 1, 0], [], []>} : vector<5x8xbf16>, vector<5x8xbf16>, vector<5x5xf32> -> vector<5x5xf32>
    %cst_120 = arith.constant 0.353553385 : f32
    %238 = vector.broadcast %cst_120 : f32 to vector<5x5xf32>
    %239 = arith.mulf %237, %238 : vector<5x5xf32>
    %cst_121 = arith.constant dense<0xFF800000> : vector<5xf32>
    %240 = vector.multi_reduction <maximumf>, %239, %cst_121 [1] : vector<5x5xf32> to vector<5xf32>
    %241 = vector.shape_cast %240 : vector<5xf32> to vector<5x1xf32>
    %242 = vector.broadcast %241 : vector<5x1xf32> to vector<5x5xf32>
    %243 = arith.subf %239, %242 : vector<5x5xf32>
    %244 = math.exp %243 : vector<5x5xf32>
    %cst_122 = arith.constant dense<0.000000e+00> : vector<5xf32>
    %245 = vector.multi_reduction <add>, %244, %cst_122 [1] : vector<5x5xf32> to vector<5xf32>
    %246 = vector.shape_cast %245 : vector<5xf32> to vector<5x1xf32>
    %247 = tpu.reciprocal %246 {approx = true} : vector<5x1xf32> -> vector<5x1xf32>
    %248 = vector.broadcast %247 : vector<5x1xf32> to vector<5x5xf32>
    %249 = arith.mulf %244, %248 : vector<5x5xf32>
    %250 = arith.truncf %249 : vector<5x5xf32> to vector<5x5xbf16>
    %251 = vector.extract_strided_slice %234 {offsets = [0, 0], sizes = [5, 8], strides = [1, 1]} : vector<5x32xbf16> to vector<5x8xbf16>
    %cst_123 = arith.constant dense<0.000000e+00> : vector<5x8xf32>
    %252 = tpu.matmul %250, %251, %cst_123 {dimension_numbers = #tpu.dot_dimension_numbers<[1], [0], [0], [1], [0, 0, 1, 1], [], []>} : vector<5x5xbf16>, vector<5x8xbf16>, vector<5x8xf32> -> vector<5x8xf32>
    %c0_124 = arith.constant 0 : index
    %c0_125 = arith.constant 0 : index
    %253 = vector.load %arg22[%c0_124, %c0_125] : memref<5x32xf32, #tpu.memory_space<vmem>>, vector<5x8xf32>
    tpu.vector_store %arg22[%c0_124, %c0_125], %252 {strides = array<i32>} : memref<5x32xf32, #tpu.memory_space<vmem>>, vector<5x8xf32>,
    %254 = vector.extract_strided_slice %232 {offsets = [0, 8], sizes = [5, 8], strides = [1, 1]} : vector<5x32xbf16> to vector<5x8xbf16>
    %255 = vector.extract_strided_slice %233 {offsets = [0, 8], sizes = [5, 8], strides = [1, 1]} : vector<5x32xbf16> to vector<5x8xbf16>
    %cst_126 = arith.constant dense<0.000000e+00> : vector<5x5xf32>
    %256 = tpu.matmul %254, %255, %cst_126 {dimension_numbers = #tpu.dot_dimension_numbers<[1], [1], [0], [0], [0, 0, 1, 0], [], []>} : vector<5x8xbf16>, vector<5x8xbf16>, vector<5x5xf32> -> vector<5x5xf32>
    %cst_127 = arith.constant 0.353553385 : f32
    %257 = vector.broadcast %cst_127 : f32 to vector<5x5xf32>
    %258 = arith.mulf %256, %257 : vector<5x5xf32>
    %cst_128 = arith.constant dense<0xFF800000> : vector<5xf32>
    %259 = vector.multi_reduction <maximumf>, %258, %cst_128 [1] : vector<5x5xf32> to vector<5xf32>
    %260 = vector.shape_cast %259 : vector<5xf32> to vector<5x1xf32>
    %261 = vector.broadcast %260 : vector<5x1xf32> to vector<5x5xf32>
    %262 = arith.subf %258, %261 : vector<5x5xf32>
    %263 = math.exp %262 : vector<5x5xf32>
    %cst_129 = arith.constant dense<0.000000e+00> : vector<5xf32>
    %264 = vector.multi_reduction <add>, %263, %cst_129 [1] : vector<5x5xf32> to vector<5xf32>
    %265 = vector.shape_cast %264 : vector<5xf32> to vector<5x1xf32>
    %266 = tpu.reciprocal %265 {approx = true} : vector<5x1xf32> -> vector<5x1xf32>
    %267 = vector.broadcast %266 : vector<5x1xf32> to vector<5x5xf32>
    %268 = arith.mulf %263, %267 : vector<5x5xf32>
    %269 = arith.truncf %268 : vector<5x5xf32> to vector<5x5xbf16>
    %270 = vector.extract_strided_slice %234 {offsets = [0, 8], sizes = [5, 8], strides = [1, 1]} : vector<5x32xbf16> to vector<5x8xbf16>
    %cst_130 = arith.constant dense<0.000000e+00> : vector<5x8xf32>
    %271 = tpu.matmul %269, %270, %cst_130 {dimension_numbers = #tpu.dot_dimension_numbers<[1], [0], [0], [1], [0, 0, 1, 1], [], []>} : vector<5x5xbf16>, vector<5x8xbf16>, vector<5x8xf32> -> vector<5x8xf32>
    %c0_131 = arith.constant 0 : index
    %c8_132 = arith.constant 8 : index
    %272 = vector.load %arg22[%c0_131, %c8_132] : memref<5x32xf32, #tpu.memory_space<vmem>>, vector<5x8xf32>
    tpu.vector_store %arg22[%c0_131, %c8_132], %271 {strides = array<i32>} : memref<5x32xf32, #tpu.memory_space<vmem>>, vector<5x8xf32>,
    %273 = vector.extract_strided_slice %232 {offsets = [0, 16], sizes = [5, 8], strides = [1, 1]} : vector<5x32xbf16> to vector<5x8xbf16>
    %274 = vector.extract_strided_slice %233 {offsets = [0, 16], sizes = [5, 8], strides = [1, 1]} : vector<5x32xbf16> to vector<5x8xbf16>
    %cst_133 = arith.constant dense<0.000000e+00> : vector<5x5xf32>
    %275 = tpu.matmul %273, %274, %cst_133 {dimension_numbers = #tpu.dot_dimension_numbers<[1], [1], [0], [0], [0, 0, 1, 0], [], []>} : vector<5x8xbf16>, vector<5x8xbf16>, vector<5x5xf32> -> vector<5x5xf32>
    %cst_134 = arith.constant 0.353553385 : f32
    %276 = vector.broadcast %cst_134 : f32 to vector<5x5xf32>
    %277 = arith.mulf %275, %276 : vector<5x5xf32>
    %cst_135 = arith.constant dense<0xFF800000> : vector<5xf32>
    %278 = vector.multi_reduction <maximumf>, %277, %cst_135 [1] : vector<5x5xf32> to vector<5xf32>
    %279 = vector.shape_cast %278 : vector<5xf32> to vector<5x1xf32>
    %280 = vector.broadcast %279 : vector<5x1xf32> to vector<5x5xf32>
    %281 = arith.subf %277, %280 : vector<5x5xf32>
    %282 = math.exp %281 : vector<5x5xf32>
    %cst_136 = arith.constant dense<0.000000e+00> : vector<5xf32>
    %283 = vector.multi_reduction <add>, %282, %cst_136 [1] : vector<5x5xf32> to vector<5xf32>
    %284 = vector.shape_cast %283 : vector<5xf32> to vector<5x1xf32>
    %285 = tpu.reciprocal %284 {approx = true} : vector<5x1xf32> -> vector<5x1xf32>
    %286 = vector.broadcast %285 : vector<5x1xf32> to vector<5x5xf32>
    %287 = arith.mulf %282, %286 : vector<5x5xf32>
    %288 = arith.truncf %287 : vector<5x5xf32> to vector<5x5xbf16>
    %289 = vector.extract_strided_slice %234 {offsets = [0, 16], sizes = [5, 8], strides = [1, 1]} : vector<5x32xbf16> to vector<5x8xbf16>
    %cst_137 = arith.constant dense<0.000000e+00> : vector<5x8xf32>
    %290 = tpu.matmul %288, %289, %cst_137 {dimension_numbers = #tpu.dot_dimension_numbers<[1], [0], [0], [1], [0, 0, 1, 1], [], []>} : vector<5x5xbf16>, vector<5x8xbf16>, vector<5x8xf32> -> vector<5x8xf32>
    %c0_138 = arith.constant 0 : index
    %c16_139 = arith.constant 16 : index
    %291 = vector.load %arg22[%c0_138, %c16_139] : memref<5x32xf32, #tpu.memory_space<vmem>>, vector<5x8xf32>
    tpu.vector_store %arg22[%c0_138, %c16_139], %290 {strides = array<i32>} : memref<5x32xf32, #tpu.memory_space<vmem>>, vector<5x8xf32>,
    %292 = vector.extract_strided_slice %232 {offsets = [0, 24], sizes = [5, 8], strides = [1, 1]} : vector<5x32xbf16> to vector<5x8xbf16>
    %293 = vector.extract_strided_slice %233 {offsets = [0, 24], sizes = [5, 8], strides = [1, 1]} : vector<5x32xbf16> to vector<5x8xbf16>
    %cst_140 = arith.constant dense<0.000000e+00> : vector<5x5xf32>
    %294 = tpu.matmul %292, %293, %cst_140 {dimension_numbers = #tpu.dot_dimension_numbers<[1], [1], [0], [0], [0, 0, 1, 0], [], []>} : vector<5x8xbf16>, vector<5x8xbf16>, vector<5x5xf32> -> vector<5x5xf32>
    %cst_141 = arith.constant 0.353553385 : f32
    %295 = vector.broadcast %cst_141 : f32 to vector<5x5xf32>
    %296 = arith.mulf %294, %295 : vector<5x5xf32>
    %cst_142 = arith.constant dense<0xFF800000> : vector<5xf32>
    %297 = vector.multi_reduction <maximumf>, %296, %cst_142 [1] : vector<5x5xf32> to vector<5xf32>
    %298 = vector.shape_cast %297 : vector<5xf32> to vector<5x1xf32>
    %299 = vector.broadcast %298 : vector<5x1xf32> to vector<5x5xf32>
    %300 = arith.subf %296, %299 : vector<5x5xf32>
    %301 = math.exp %300 : vector<5x5xf32>
    %cst_143 = arith.constant dense<0.000000e+00> : vector<5xf32>
    %302 = vector.multi_reduction <add>, %301, %cst_143 [1] : vector<5x5xf32> to vector<5xf32>
    %303 = vector.shape_cast %302 : vector<5xf32> to vector<5x1xf32>
    %304 = tpu.reciprocal %303 {approx = true} : vector<5x1xf32> -> vector<5x1xf32>
    %305 = vector.broadcast %304 : vector<5x1xf32> to vector<5x5xf32>
    %306 = arith.mulf %301, %305 : vector<5x5xf32>
    %307 = arith.truncf %306 : vector<5x5xf32> to vector<5x5xbf16>
    %308 = vector.extract_strided_slice %234 {offsets = [0, 24], sizes = [5, 8], strides = [1, 1]} : vector<5x32xbf16> to vector<5x8xbf16>
    %cst_144 = arith.constant dense<0.000000e+00> : vector<5x8xf32>
    %309 = tpu.matmul %307, %308, %cst_144 {dimension_numbers = #tpu.dot_dimension_numbers<[1], [0], [0], [1], [0, 0, 1, 1], [], []>} : vector<5x5xbf16>, vector<5x8xbf16>, vector<5x8xf32> -> vector<5x8xf32>
    %c0_145 = arith.constant 0 : index
    %c24_146 = arith.constant 24 : index
    %310 = vector.load %arg22[%c0_145, %c24_146] : memref<5x32xf32, #tpu.memory_space<vmem>>, vector<5x8xf32>
    tpu.vector_store %arg22[%c0_145, %c24_146], %309 {strides = array<i32>} : memref<5x32xf32, #tpu.memory_space<vmem>>, vector<5x8xf32>,
    %c0_147 = arith.constant 0 : index
    %c0_148 = arith.constant 0 : index
    %311 = vector.load %arg22[%c0_147, %c0_148] : memref<5x32xf32, #tpu.memory_space<vmem>>, vector<5x32xf32>
    %312 = arith.truncf %311 : vector<5x32xf32> to vector<5x32xbf16>
    %cst_149 = arith.constant dense<0.000000e+00> : vector<5x32xf32>
    %313 = tpu.matmul %312, %226, %cst_149 {dimension_numbers = #tpu.dot_dimension_numbers<[1], [0], [0], [1], [0, 0, 1, 1], [], []>} : vector<5x32xbf16>, vector<32x32xbf16>, vector<5x32xf32> -> vector<5x32xf32>
    %314 = arith.addf %194, %313 : vector<5x32xf32>
    %c1_150 = arith.constant 1 : index
    %c0_151 = arith.constant 0 : index
    %c0_152 = arith.constant 0 : index
    %315 = vector.load %arg11[%c1_150, %c0_151, %c0_152] : memref<2x1x32xf32, #tpu.memory_space<vmem>>, vector<1x1x32xf32>
    %316 = vector.shape_cast %315 : vector<1x1x32xf32> to vector<1x32xf32>
    %317 = vector.broadcast %316 : vector<1x32xf32> to vector<5x32xf32>
    %318 = arith.addf %314, %317 : vector<5x32xf32>
    %c1_153 = arith.constant 1 : index
    %c0_154 = arith.constant 0 : index
    %c0_155 = arith.constant 0 : index
    %319 = vector.load %arg12[%c1_153, %c0_154, %c0_155] : memref<2x1x32xf32, #tpu.memory_space<vmem>>, vector<1x1x32xf32>
    %320 = vector.shape_cast %319 : vector<1x1x32xf32> to vector<1x32xf32>
    %c1_156 = arith.constant 1 : index
    %c0_157 = arith.constant 0 : index
    %c0_158 = arith.constant 0 : index
    %321 = vector.load %arg13[%c1_156, %c0_157, %c0_158] : memref<2x1x32xf32, #tpu.memory_space<vmem>>, vector<1x1x32xf32>
    %322 = vector.shape_cast %321 : vector<1x1x32xf32> to vector<1x32xf32>
    %cst_159 = arith.constant dense<0.000000e+00> : vector<5xf32>
    %323 = vector.multi_reduction <add>, %318, %cst_159 [1] : vector<5x32xf32> to vector<5xf32>
    %324 = vector.shape_cast %323 : vector<5xf32> to vector<5x1xf32>
    %cst_160 = arith.constant 3.200000e+01 : f32
    %325 = vector.broadcast %cst_160 : f32 to vector<5x1xf32>
    %326 = arith.divf %324, %325 : vector<5x1xf32>
    %327 = vector.broadcast %326 : vector<5x1xf32> to vector<5x32xf32>
    %328 = arith.subf %318, %327 : vector<5x32xf32>
    %329 = arith.mulf %328, %328 : vector<5x32xf32>
    %cst_161 = arith.constant dense<0.000000e+00> : vector<5xf32>
    %330 = vector.multi_reduction <add>, %329, %cst_161 [1] : vector<5x32xf32> to vector<5xf32>
    %331 = vector.shape_cast %330 : vector<5xf32> to vector<5x1xf32>
    %cst_162 = arith.constant 3.200000e+01 : f32
    %332 = vector.broadcast %cst_162 : f32 to vector<5x1xf32>
    %333 = arith.divf %331, %332 : vector<5x1xf32>
    %334 = vector.broadcast %326 : vector<5x1xf32> to vector<5x32xf32>
    %335 = arith.subf %318, %334 : vector<5x32xf32>
    %cst_163 = arith.constant 9.99999997E-7 : f32
    %336 = vector.broadcast %cst_163 : f32 to vector<5x1xf32>
    %337 = arith.addf %333, %336 : vector<5x1xf32>
    %338 = math.rsqrt %337 : vector<5x1xf32>
    %339 = vector.broadcast %338 : vector<5x1xf32> to vector<5x32xf32>
    %340 = arith.mulf %335, %339 : vector<5x32xf32>
    %341 = vector.broadcast %320 : vector<1x32xf32> to vector<5x32xf32>
    %342 = arith.mulf %340, %341 : vector<5x32xf32>
    %343 = vector.broadcast %322 : vector<1x32xf32> to vector<5x32xf32>
    %344 = arith.addf %342, %343 : vector<5x32xf32>
    %c1_164 = arith.constant 1 : index
    %c0_165 = arith.constant 0 : index
    %c0_166 = arith.constant 0 : index
    %345 = vector.load %arg14[%c1_164, %c0_165, %c0_166] : memref<2x32x128xbf16, #tpu.memory_space<vmem>>, vector<1x32x128xbf16>
    %346 = vector.shape_cast %345 : vector<1x32x128xbf16> to vector<32x128xbf16>
    %c1_167 = arith.constant 1 : index
    %c0_168 = arith.constant 0 : index
    %c0_169 = arith.constant 0 : index
    %347 = vector.load %arg15[%c1_167, %c0_168, %c0_169] : memref<2x1x128xf32, #tpu.memory_space<vmem>>, vector<1x1x128xf32>
    %348 = vector.shape_cast %347 : vector<1x1x128xf32> to vector<1x128xf32>
    %c1_170 = arith.constant 1 : index
    %c0_171 = arith.constant 0 : index
    %c0_172 = arith.constant 0 : index
    %349 = vector.load %arg16[%c1_170, %c0_171, %c0_172] : memref<2x128x32xbf16, #tpu.memory_space<vmem>>, vector<1x128x32xbf16>
    %350 = vector.shape_cast %349 : vector<1x128x32xbf16> to vector<128x32xbf16>
    %c1_173 = arith.constant 1 : index
    %c0_174 = arith.constant 0 : index
    %c0_175 = arith.constant 0 : index
    %351 = vector.load %arg17[%c1_173, %c0_174, %c0_175] : memref<2x1x32xf32, #tpu.memory_space<vmem>>, vector<1x1x32xf32>
    %352 = vector.shape_cast %351 : vector<1x1x32xf32> to vector<1x32xf32>
    %353 = arith.truncf %344 : vector<5x32xf32> to vector<5x32xbf16>
    %cst_176 = arith.constant dense<0.000000e+00> : vector<5x128xf32>
    %354 = tpu.matmul %353, %346, %cst_176 {dimension_numbers = #tpu.dot_dimension_numbers<[1], [0], [0], [1], [0, 0, 1, 1], [], []>} : vector<5x32xbf16>, vector<32x128xbf16>, vector<5x128xf32> -> vector<5x128xf32>
    %355 = vector.broadcast %348 : vector<1x128xf32> to vector<5x128xf32>
    %356 = arith.addf %354, %355 : vector<5x128xf32>
    %cst_177 = arith.constant 5.000000e-01 : f32
    %357 = vector.broadcast %cst_177 : f32 to vector<5x128xf32>
    %358 = arith.mulf %357, %356 : vector<5x128xf32>
    %cst_178 = arith.constant 4.471500e-02 : f32
    %359 = vector.broadcast %cst_178 : f32 to vector<5x128xf32>
    %360 = arith.mulf %359, %356 : vector<5x128xf32>
    %361 = arith.mulf %360, %356 : vector<5x128xf32>
    %362 = arith.mulf %361, %356 : vector<5x128xf32>
    %363 = arith.addf %356, %362 : vector<5x128xf32>
    %cst_179 = arith.constant 0.797884583 : f32
    %364 = vector.broadcast %cst_179 : f32 to vector<5x128xf32>
    %365 = arith.mulf %364, %363 : vector<5x128xf32>
    %366 = math.tanh %365 : vector<5x128xf32>
    %cst_180 = arith.constant 1.000000e+00 : f32
    %367 = vector.broadcast %cst_180 : f32 to vector<5x128xf32>
    %368 = arith.addf %367, %366 : vector<5x128xf32>
    %369 = arith.mulf %358, %368 : vector<5x128xf32>
    %370 = arith.truncf %369 : vector<5x128xf32> to vector<5x128xbf16>
    %cst_181 = arith.constant dense<0.000000e+00> : vector<5x32xf32>
    %371 = tpu.matmul %370, %350, %cst_181 {dimension_numbers = #tpu.dot_dimension_numbers<[1], [0], [0], [1], [0, 0, 1, 1], [], []>} : vector<5x128xbf16>, vector<128x32xbf16>, vector<5x32xf32> -> vector<5x32xf32>
    %372 = vector.broadcast %352 : vector<1x32xf32> to vector<5x32xf32>
    %373 = arith.addf %371, %372 : vector<5x32xf32>
    %374 = arith.addf %318, %373 : vector<5x32xf32>
    %c0_182 = arith.constant 0 : index
    %c0_183 = arith.constant 0 : index
    %375 = vector.load %arg18[%c0_182, %c0_183] : memref<1x32xf32, #tpu.memory_space<vmem>>, vector<1x32xf32>
    %c0_184 = arith.constant 0 : index
    %c0_185 = arith.constant 0 : index
    %376 = vector.load %arg19[%c0_184, %c0_185] : memref<1x32xf32, #tpu.memory_space<vmem>>, vector<1x32xf32>
    %cst_186 = arith.constant dense<0.000000e+00> : vector<5xf32>
    %377 = vector.multi_reduction <add>, %374, %cst_186 [1] : vector<5x32xf32> to vector<5xf32>
    %378 = vector.shape_cast %377 : vector<5xf32> to vector<5x1xf32>
    %cst_187 = arith.constant 3.200000e+01 : f32
    %379 = vector.broadcast %cst_187 : f32 to vector<5x1xf32>
    %380 = arith.divf %378, %379 : vector<5x1xf32>
    %381 = vector.broadcast %380 : vector<5x1xf32> to vector<5x32xf32>
    %382 = arith.subf %374, %381 : vector<5x32xf32>
    %383 = arith.mulf %382, %382 : vector<5x32xf32>
    %cst_188 = arith.constant dense<0.000000e+00> : vector<5xf32>
    %384 = vector.multi_reduction <add>, %383, %cst_188 [1] : vector<5x32xf32> to vector<5xf32>
    %385 = vector.shape_cast %384 : vector<5xf32> to vector<5x1xf32>
    %cst_189 = arith.constant 3.200000e+01 : f32
    %386 = vector.broadcast %cst_189 : f32 to vector<5x1xf32>
    %387 = arith.divf %385, %386 : vector<5x1xf32>
    %388 = vector.broadcast %380 : vector<5x1xf32> to vector<5x32xf32>
    %389 = arith.subf %374, %388 : vector<5x32xf32>
    %cst_190 = arith.constant 9.99999997E-7 : f32
    %390 = vector.broadcast %cst_190 : f32 to vector<5x1xf32>
    %391 = arith.addf %387, %390 : vector<5x1xf32>
    %392 = math.rsqrt %391 : vector<5x1xf32>
    %393 = vector.broadcast %392 : vector<5x1xf32> to vector<5x32xf32>
    %394 = arith.mulf %389, %393 : vector<5x32xf32>
    %395 = vector.broadcast %375 : vector<1x32xf32> to vector<5x32xf32>
    %396 = arith.mulf %394, %395 : vector<5x32xf32>
    %397 = vector.broadcast %376 : vector<1x32xf32> to vector<5x32xf32>
    %398 = arith.addf %396, %397 : vector<5x32xf32>
    %c0_191 = arith.constant 0 : index
    %c0_192 = arith.constant 0 : index
    %c0_193 = arith.constant 0 : index
    %399 = vector.load %arg20[%c0_191, %c0_192, %c0_193] : memref<1x5x32xf32, #tpu.memory_space<vmem>>, vector<1x5x32xf32>
    %400 = vector.shape_cast %399 : vector<1x5x32xf32> to vector<5x32xf32>
    %401 = vector.shape_cast %398 : vector<5x32xf32> to vector<1x5x32xf32>
    tpu.vector_store %arg20[%c0_191, %c0_192, %c0_193], %401 {strides = array<i32>} : memref<1x5x32xf32, #tpu.memory_space<vmem>>, vector<1x5x32xf32>,
    return
  }
  func.func @transform_0(%arg0: i32) -> (i32, i32, i32) {
    %c0_i32 = arith.constant 0 : i32
    %c0_i32_0 = arith.constant 0 : i32
    %c0_i32_1 = arith.constant 0 : i32
    return %arg0, %c0_i32, %c0_i32_0 : i32, i32, i32
  }
  func.func @transform_1(%arg0: i32) -> (i32, i32) {
    %c0_i32 = arith.constant 0 : i32
    %c0_i32_0 = arith.constant 0 : i32
    %c0_i32_1 = arith.constant 0 : i32
    return %c0_i32, %c0_i32_0 : i32, i32
  }
  func.func @transform_2(%arg0: i32) -> (i32, i32) {
    %c0_i32 = arith.constant 0 : i32
    %c0_i32_0 = arith.constant 0 : i32
    %c0_i32_1 = arith.constant 0 : i32
    return %c0_i32, %c0_i32_0 : i32, i32
  }
  func.func @transform_3(%arg0: i32) -> (i32, i32) {
    %c0_i32 = arith.constant 0 : i32
    %c0_i32_0 = arith.constant 0 : i32
    %c0_i32_1 = arith.constant 0 : i32
    return %c0_i32, %c0_i32_0 : i32, i32
  }
  func.func @transform_4(%arg0: i32) -> (i32, i32) {
    %c0_i32 = arith.constant 0 : i32
    %c0_i32_0 = arith.constant 0 : i32
    %c0_i32_1 = arith.constant 0 : i32
    return %c0_i32, %c0_i32_0 : i32, i32
  }
  func.func @transform_5(%arg0: i32) -> (i32, i32, i32) {
    %c0_i32 = arith.constant 0 : i32
    %c0_i32_0 = arith.constant 0 : i32
    %c0_i32_1 = arith.constant 0 : i32
    %c0_i32_2 = arith.constant 0 : i32
    return %c0_i32, %c0_i32_0, %c0_i32_1 : i32, i32, i32
  }
  func.func @transform_6(%arg0: i32) -> (i32, i32, i32) {
    %c0_i32 = arith.constant 0 : i32
    %c0_i32_0 = arith.constant 0 : i32
    %c0_i32_1 = arith.constant 0 : i32
    %c0_i32_2 = arith.constant 0 : i32
    return %c0_i32, %c0_i32_0, %c0_i32_1 : i32, i32, i32
  }
  func.func @transform_7(%arg0: i32) -> (i32, i32, i32) {
    %c0_i32 = arith.constant 0 : i32
    %c0_i32_0 = arith.constant 0 : i32
    %c0_i32_1 = arith.constant 0 : i32
    %c0_i32_2 = arith.constant 0 : i32
    return %c0_i32, %c0_i32_0, %c0_i32_1 : i32, i32, i32
  }
  func.func @transform_8(%arg0: i32) -> (i32, i32, i32) {
    %c0_i32 = arith.constant 0 : i32
    %c0_i32_0 = arith.constant 0 : i32
    %c0_i32_1 = arith.constant 0 : i32
    %c0_i32_2 = arith.constant 0 : i32
    return %c0_i32, %c0_i32_0, %c0_i32_1 : i32, i32, i32
  }
  func.func @transform_9(%arg0: i32) -> (i32, i32, i32) {
    %c0_i32 = arith.constant 0 : i32
    %c0_i32_0 = arith.constant 0 : i32
    %c0_i32_1 = arith.constant 0 : i32
    %c0_i32_2 = arith.constant 0 : i32
    return %c0_i32, %c0_i32_0, %c0_i32_1 : i32, i32, i32
  }
  func.func @transform_10(%arg0: i32) -> (i32, i32, i32) {
    %c0_i32 = arith.constant 0 : i32
    %c0_i32_0 = arith.constant 0 : i32
    %c0_i32_1 = arith.constant 0 : i32
    %c0_i32_2 = arith.constant 0 : i32
    return %c0_i32, %c0_i32_0, %c0_i32_1 : i32, i32, i32
  }
  func.func @transform_11(%arg0: i32) -> (i32, i32, i32) {
    %c0_i32 = arith.constant 0 : i32
    %c0_i32_0 = arith.constant 0 : i32
    %c0_i32_1 = arith.constant 0 : i32
    %c0_i32_2 = arith.constant 0 : i32
    return %c0_i32, %c0_i32_0, %c0_i32_1 : i32, i32, i32
  }
  func.func @transform_12(%arg0: i32) -> (i32, i32, i32) {
    %c0_i32 = arith.constant 0 : i32
    %c0_i32_0 = arith.constant 0 : i32
    %c0_i32_1 = arith.constant 0 : i32
    %c0_i32_2 = arith.constant 0 : i32
    return %c0_i32, %c0_i32_0, %c0_i32_1 : i32, i32, i32
  }
  func.func @transform_13(%arg0: i32) -> (i32, i32, i32) {
    %c0_i32 = arith.constant 0 : i32
    %c0_i32_0 = arith.constant 0 : i32
    %c0_i32_1 = arith.constant 0 : i32
    %c0_i32_2 = arith.constant 0 : i32
    return %c0_i32, %c0_i32_0, %c0_i32_1 : i32, i32, i32
  }
  func.func @transform_14(%arg0: i32) -> (i32, i32, i32) {
    %c0_i32 = arith.constant 0 : i32
    %c0_i32_0 = arith.constant 0 : i32
    %c0_i32_1 = arith.constant 0 : i32
    %c0_i32_2 = arith.constant 0 : i32
    return %c0_i32, %c0_i32_0, %c0_i32_1 : i32, i32, i32
  }
  func.func @transform_15(%arg0: i32) -> (i32, i32, i32) {
    %c0_i32 = arith.constant 0 : i32
    %c0_i32_0 = arith.constant 0 : i32
    %c0_i32_1 = arith.constant 0 : i32
    %c0_i32_2 = arith.constant 0 : i32
    return %c0_i32, %c0_i32_0, %c0_i32_1 : i32, i32, i32
  }
  func.func @transform_16(%arg0: i32) -> (i32, i32, i32) {
    %c0_i32 = arith.constant 0 : i32
    %c0_i32_0 = arith.constant 0 : i32
    %c0_i32_1 = arith.constant 0 : i32
    %c0_i32_2 = arith.constant 0 : i32
    return %c0_i32, %c0_i32_0, %c0_i32_1 : i32, i32, i32
  }
  func.func @transform_17(%arg0: i32) -> (i32, i32) {
    %c0_i32 = arith.constant 0 : i32
    %c0_i32_0 = arith.constant 0 : i32
    %c0_i32_1 = arith.constant 0 : i32
    return %c0_i32, %c0_i32_0 : i32, i32
  }
  func.func @transform_18(%arg0: i32) -> (i32, i32) {
    %c0_i32 = arith.constant 0 : i32
    %c0_i32_0 = arith.constant 0 : i32
    %c0_i32_1 = arith.constant 0 : i32
    return %c0_i32, %c0_i32_0 : i32, i32
  }
  func.func @transform_19(%arg0: i32) -> (i32, i32, i32) {
    %c0_i32 = arith.constant 0 : i32
    %c0_i32_0 = arith.constant 0 : i32
    %c0_i32_1 = arith.constant 0 : i32
    return %arg0, %c0_i32, %c0_i32_0 : i32, i32, i32
  }
}

</mosaic_0001>

<bundles_post_ra>
// kernel: blip_base_forward.1
= control target key start
LH: loop header
LB: loop body
LE: loop exit
PB: predicated region body
PF: predicated region fallthrough
CT: control target
= control target key end

     0   :  { %s3637_s0 = inlined_call_operand.vmem [shape: bf16[2,4,192], index: 0, kind: input, shape index: {}]   ;;  %s3638_s1 = inlined_call_operand.vmem [shape: bf16[192,32], index: 1, kind: input, shape index: {}]   ;;  %s3639_s2 = inlined_call_operand.vmem [shape: f32[1,32], index: 2, kind: input, shape index: {}]   ;;  %s3640_s3 = inlined_call_operand.vmem [shape: f32[1,32], index: 3, kind: input, shape index: {}]   ;;  %s3641_s4 = inlined_call_operand.vmem [shape: f32[5,32], index: 4, kind: input, shape index: {}]   ;;  %s3642_s5 = inlined_call_operand.vmem [shape: f32[2,1,32], index: 5, kind: input, shape index: {}]   ;;  %s3643_s6 = inlined_call_operand.vmem [shape: f32[2,1,32], index: 6, kind: input, shape index: {}]   ;;  %s3644_s7 = inlined_call_operand.vmem [shape: bf16[2,32,96], index: 7, kind: input, shape index: {}]   ;;  %s3645_s8 = inlined_call_operand.vmem [shape: f32[2,1,96], index: 8, kind: input, shape index: {}]   ;;  %s3646_s9 = inlined_call_operand.vmem [shape: bf16[2,32,32], index: 9, kind: input, shape index: {}]   ;;  %s3647_s10 = inlined_call_operand.vmem [shape: f32[2,1,32], index: 10, kind: input, shape index: {}]   ;;  %s3648_s11 = inlined_call_operand.vmem [shape: f32[2,1,32], index: 11, kind: input, shape index: {}]   ;;  %s3649_s12 = inlined_call_operand.vmem [shape: f32[2,1,32], index: 12, kind: input, shape index: {}]   ;;  %s3650_s13 = inlined_call_operand.vmem [shape: bf16[2,32,128], index: 13, kind: input, shape index: {}]   ;;  %s3651_s14 = inlined_call_operand.vmem [shape: f32[2,1,128], index: 14, kind: input, shape index: {}]   ;;  %s3652_s15 = inlined_call_operand.vmem [shape: bf16[2,128,32], index: 15, kind: input, shape index: {}]   ;;  %s3653_s16 = inlined_call_operand.vmem [shape: f32[2,1,32], index: 16, kind: input, shape index: {}]   ;;  %s3654_s17 = inlined_call_operand.vmem [shape: f32[1,32], index: 17, kind: input, shape index: {}]   ;;  %s3655_s18 = inlined_call_operand.vmem [shape: f32[1,32], index: 18, kind: input, shape index: {}]   ;;  %s3656_s19 = inlined_call_operand.vmem [shape: f32[2,5,32], index: 19, kind: output, shape index: {}]  }
   0x1   :  { %3668 = sst [smem:[#allocation4_spill]] %s3637_s0  ;;  %s3187_s0 = smov 0  }
   0x2   :  { %3669 = sst [smem:[#allocation5_spill]] %s3638_s1 }
   0x3   :  { %3670 = sst [smem:[#allocation6_spill]] %s3639_s2 }
   0x4   :  { %3671 = sst [smem:[#allocation7_spill]] %s3640_s3 }
   0x5 LB: > { %s2567_s30 = sadd.s32 4294967295, %s3067_s0   ;;  %p2571_p0 = scmp.ge.s32.totalorder %s3067_s0, 1  ;;  %s3067_s0 = sphi %s3187_s0, %s29_s0  }
   0x6   : > { %p537_p1 = scmp.lt.s32.totalorder %s3067_s0, 3 }
   0x8   : > { %p538_p2 = pnand %p2571_p0, %p537_p1 }
   0x9   : > { %s3672_s1 = sld [smem:[#allocation5_spill]] (!%p538_p2)  ;;  %v3069_v1 = vmov (!%p538_p2), 0   ;;  %p592_p3 = scmp.lt.s32.totalorder (!%p538_p2), %s2567_s30, 1  ;;  %vm716_vm0 = vcmask (!%p538_p2), 523264   ;;  %v765_v16 = vld [vmem:[%s3641_s4] sm:$0x1] (!%p538_p2) }
   0xa   : > { %541 = sbr.rel (%p538_p2) target bundleno = 7824 (0x1e90), region = 96  ;;  %720 = vmatprep.subr.bf16.mxu0 (!%p538_p2), %v3069_v1  ;;  %s3673_s27 = sld [smem:[#allocation4_spill]] (!%p538_p2)  ;;  %vm767_vm1 = vcmask (!%p538_p2), 253952   ;;  %v760_v20 = vld [vmem:[%s3641_s4 + $0x1] sm:$0xf] (!%p538_p2)  ;;  %vm762_vm2 = vcmask (!%p538_p2), 257024  }
   0xb   : > { %s3674_s3 = sld [smem:[#allocation7_spill]] (!%p538_p2)  ;;  %s3675_s20 = sld [smem:[#allocation6_spill]] (!%p538_p2)  ;;  %vm772_vm3 = vcmask (!%p538_p2), 258048   ;;  %v2987_v33 = vld [vmem:[%s3644_s7] sm:$0xff] (!%p538_p2)   ;;  %v3070_v34 = vmov (!%p538_p2), 0.0   ;;  %vm3071_vm4 = vmmov (!%p538_p2), 0  }
   0xc   : > { %2765 = vmatprep.subr.bf16.mxu1 (!%p538_p2), %v3070_v34  ;;  %2769 = vmatprep.mubr.msk.bf16.mxu1 (!%p538_p2), %vm3071_vm4, %v3070_v34  ;;  %v2988_v35 = vld [vmem:[%s3644_s7 + $0x8] sm:$0xff] (!%p538_p2)   ;;  %v2590_v40 = vld [vmem:[%s3642_s5] ss:$0 sm:$0xff] (!%p538_p2)  ;;  %vm829_vm5 = vcmask (!%p538_p2), 261120   ;;  %s3072_s21 = smov (!%p538_p2), 64   ;;  %s3073_s22 = smov (!%p538_p2), 96  }
   0xd   : > { %2766 = vmatpush3.bf16.msra.mxu1 (!%p538_p2), %v2987_v33  ;;  %v2591_v42 = vld [vmem:[%s3643_s6] ss:$0 sm:$0xff] (!%p538_p2)  ;;  %vm877_vm6 = vcmask (!%p538_p2), 64512   ;;  %vm944_vm7 = vcmask (!%p538_p2), 1041408   ;;  %vm945_vm8 = vcmask (!%p538_p2), 1042432   ;;  %v3074_v55 = vmov (!%p538_p2), 65535  }
   0xe   : > { %2767 = vmatprep.subr.bf16.mxu1 (!%p538_p2), %v3070_v34  ;;  %v2592_v46 = vld [vmem:[%s3645_s8] ss:$0 sm:$0xff] (!%p538_p2)  ;;  %v946_v56 = vsel (!%p538_p2), %vm944_vm7, 4294967295, %v3074_v55  ;;  %vm925_vm9 = vcmask (!%p538_p2), 36864   ;;  %s3075_s2 = smov (!%p538_p2), 88   ;;  %s3667_s23 = smov (!%p538_p2), 120  }
   0xf   : > { %v2975_v0 = vld [vmem:[%s3672_s1] sm:$0xff] (!%p538_p2)   ;;  %v2976_v2 = vld [vmem:[%s3672_s1 + $0x8] sm:$0xff] (!%p538_p2)   ;;  %v2977_v3 = vld [vmem:[%s3672_s1 + $0x10] sm:$0xff] (!%p538_p2)   ;;  %v3289_v57 = vsel (!%p538_p2), %vm945_vm8, %v946_v56, 0  ;;  %vm940_vm10 = vcmask (!%p538_p2), 39936   ;;  %vm991_vm11 = vcmask (!%p538_p2), 61440  }
  0x10   : > { %721 = vmatpush1.bf16.msra.mxu0 (!%p538_p2), %v2975_v0  ;;  %v2978_v4 = vld [vmem:[%s3672_s1 + $0x18] sm:$0xff] (!%p538_p2)   ;;  %v2979_v5 = vld [vmem:[%s3672_s1 + $0x20] sm:$0xff] (!%p538_p2)   ;;  %v2980_v8 = vld [vmem:[%s3672_s1 + $0x28] sm:$0xff] (!%p538_p2)   ;;  %s3658_s24 = smov (!%p538_p2), 56   ;;  %s3662_s26 = smov (!%p538_p2), 48   ;;  %vm1108_vm12 = vcmask (!%p538_p2), 127040  }
  0x11   : > { %722 = vmatprep.subr.bf16.mxu0 %v3069_v1  ;;  %s3687_s30 = smov (!%p592_p3, %s2567_s30), 1  ;;  %v2981_v9 = vld [vmem:[%s3672_s1 + $0x30] sm:$0xff]   ;;  %v2982_v10 = vld [vmem:[%s3672_s1 + $0x38] sm:$0xff]   ;;  %v2983_v11 = vld [vmem:[%s3672_s1 + $0x40] sm:$0xff]   ;;  %2768 = vmatpush3.bf16.msra.mxu1 %v2988_v35  ;;  %s3661_s29 = smov 40   ;;  %vm1225_vm13 = vcmask 192640  }
  0x12   : > { %s2696_s25 = sshll.u32 %s3687_s30, 2  ;;  %v2984_v12 = vld [vmem:[%s3672_s1 + $0x48] sm:$0xff]   ;;  %v2985_v13 = vld [vmem:[%s3672_s1 + $0x50] sm:$0xff]   ;;  %v2986_v14 = vld [vmem:[%s3672_s1 + $0x58] sm:$0xff]   ;;  %2773 = vmatprep.subr.bf16.mxu1 %v3070_v34  ;;  %vm1342_vm14 = vcmask 258240  }
  0x13   : > { %s596_s28 = scalar_lea.vmem %s3673_s27, %s2696_s25  ;;  %v764_v15 = vld [vmem:[%s3674_s3] sm:$0x1]  ;;  %s3078_s25 = smov 80  }
  0x14   : > { %723 = vmatpush1.bf16.msra.mxu0 %v2976_v2  ;;  %v2576_v6 = vld.sshfl [vmem:[%s596_s28] sm:$0x33 pattern:$0x76325410]  ;;  %v766_v17 = vadd.f32 %v765_v16, %v764_v15  ;;  %s3666_s3 = smov 112   ;;  %s3665_s27 = smov 72  }
  0x15   : > { %724 = vmatprep.subr.bf16.mxu0 %v3069_v1  ;;  %v642_v7 = vcombine.high %v2576_v6, %v2576_v6  ;;  %v2575_v18 = vld [vmem:[%s3675_s20] ss:$0 sm:$0xff]  ;;  %s3663_s28 = smov 104   ;;  %s3660_s20 = smov 8  }
  0x16   : > { %768 = vst.msk [vmem:[#allocation2] sm:$0x1] %vm767_vm1, %v766_v17 }
  0x17   : > { %2589 = vmatprep.mubr.msk.bf16.mxu0 %vm716_vm0, %v642_v7 }
  0x18   : > { %725 = vmatpush1.bf16.msra.mxu0 %v2977_v3 }
  0x19   : > { %726 = vmatprep.subr.bf16.mxu0 %v3069_v1 }
  0x1c   : > { %727 = vmatpush1.bf16.msra.mxu0 %v2978_v4 }
  0x1d   : > { %728 = vmatprep.subr.bf16.mxu0 %v3069_v1 }
  0x20   : > { %729 = vmatpush1.bf16.msra.mxu0 %v2979_v5 }
  0x21   : > { %730 = vmatprep.subr.bf16.mxu0 %v3069_v1 }
  0x24   : > { %731 = vmatpush1.bf16.msra.mxu0 %v2980_v8 }
  0x25   : > { %732 = vmatprep.subr.bf16.mxu0 %v3069_v1 }
  0x28   : > { %733 = vmatpush1.bf16.msra.mxu0 %v2981_v9 }
  0x29   : > { %734 = vmatprep.subr.bf16.mxu0 %v3069_v1 }
  0x2c   : > { %735 = vmatpush1.bf16.msra.mxu0 %v2982_v10 }
  0x2d   : > { %736 = vmatprep.subr.bf16.mxu0 %v3069_v1 }
  0x30   : > { %737 = vmatpush1.bf16.msra.mxu0 %v2983_v11 }
  0x31   : > { %738 = vmatprep.subr.bf16.mxu0 %v3069_v1 }
  0x34   : > { %739 = vmatpush1.bf16.msra.mxu0 %v2984_v12 }
  0x35   : > { %740 = vmatprep.subr.bf16.mxu0 %v3069_v1 }
  0x38   : > { %741 = vmatpush1.bf16.msra.mxu0 %v2985_v13 }
  0x39   : > { %742 = vmatprep.subr.bf16.mxu0 %v3069_v1 }
  0x3c   : > { %743 = vmatpush1.bf16.msra.mxu0 %v2986_v14 }
  0x3d   : > { %2829 = vmatprep.subr.bf16.mxu0 %v3070_v34 }
  0x3f   : > { %753 = vmatmul.mubr.bf16.vlgmr.msra.gmra.mrb[0].mxu0 %v2576_v6 }
  0x40   : > { %2833 = vmatprep.mubr.msk.bf16.mxu0 %vm3071_vm4, %v3070_v34 }
 0x112   : > { %v754_v19 = vpop.f32.mrb[0].mxu0 }
 0x113   : > { %v755_v21 = vadd.f32 %v2575_v18, %v754_v19  ;;  %v756_v22 = vpop.f32.mrb[1].mxu0 }
 0x114   : > { %v757_v23 = vpop.f32.mrb[2].mxu0 }
 0x115   : > { %v761_v24 = vadd.f32 %v760_v20, %v755_v21  ;;  %v758_v25 = vpop.f32.mrb[3].mxu0 }
 0x117   : > { %763 = vst.msk [vmem:[#allocation2 + $0x1] sm:$0xf] %vm762_vm2, %v761_v24 }
 0x11e   : > { %v3249_v26 = vld [vmem:[#allocation2] sm:$0x1f] }
 0x11f   : > { %v773_v27 = vsel %vm772_vm3, %v3249_v26, 0.0 }
 0x120   : > { %774 = vadd.xlane.f32.xlu0 %v773_v27 }
 0x1ad   : > { %v775_v28 = vpop.xlane.xlu0 %774 }
 0x1ae   : > { %v777_v29 = vmul.f32 0.03125, %v775_v28 }
 0x1b0   : > { %v778_v30 = vsub.f32 %v3249_v26, %v777_v29 }
 0x1b2   : > { %v779_v31 = vmul.f32 %v778_v30, %v778_v30 }
 0x1b4   : > { %v780_v32 = vsel %vm772_vm3, %v779_v31, 0.0 }
 0x1b5   : > { %781 = vadd.xlane.f32.xlu0 %v780_v32 }
 0x242   : > { %v782_v36 = vpop.xlane.xlu0 %781 }
 0x243   : > { %v783_v37 = vmul.f32 0.03125, %v782_v36 }
 0x245   : > { %v784_v38 = vadd.f32 1e-06, %v783_v37 }
 0x247   : > { %3015 = vrsqrt.f32 %v784_v38 }
 0x251   : > { %v3016_v39 = vpop.eup %3015 }
 0x252   : > { %v786_v41 = vmul.f32 %v3016_v39, %v778_v30 }
 0x254   : > { %v793_v43 = vmul.f32 %v2590_v40, %v786_v41 }
 0x256   : > { %v800_v44 = vadd.f32 %v2591_v42, %v793_v43 }
 0x258   : > { %v810_v45 = vpack.c.bf16 %v800_v44, %v800_v44 }
 0x25a   : > { %2770 = vmatmul.mubr.msk.bf16.vlgmr.msra.gmra.mrb[0].mxu1 %vm829_vm5, %v810_v45 }
 0x25b   : > { %2775 = vmatprep.mubr.msk.bf16.mxu1 %vm3071_vm4, %v3070_v34 }
 0x32d   : > { %v867_v47 = vpop.f32.mrb[0].mxu1 }
 0x32e   : > { %v868_v48 = vadd.f32 %v2592_v46, %v867_v47  ;;  %v2771_v49 = vpop.f32.mrb[1].mxu1 }
 0x32f   : > { %v870_v50 = vpop.f32.mrb[2].mxu1 }
 0x330   : > { %v3281_v51 = vpack.c.bf16 %v868_v48, %v868_v48  ;;  %v2772_v52 = vpop.f32.mrb[3].mxu1 }
 0x332   : > { %938 = vrot.lane.b32.xlu0 %v3281_v51, %s3072_s21  ;;  %875 = vrot.lane.b32.xlu1 %v3281_v51, %s3073_s22 }
 0x3a4   : > { %v876_v53 = vpop.permute.xlu1 %875  ;;  %v939_v58 = vpop.permute.xlu0 %938 }
 0x3a5   : > { %v882_v54 = vsel %vm877_vm6, %v876_v53, 0  ;;  %v949_v59 = vand.u32 %v3289_v57, %v939_v58 }
 0x3a6   : > { %2774 = vmatpush3.bf16.xpose.msra.mxu1 %v882_v54 }
 0x3a7   : > { %2779 = vmatprep.subr.bf16.mxu1 %v3070_v34 }
 0x3ad   : > { %2776 = vmatmul.mubr.msk.bf16.vlgmr.msra.gmra.mrb[4].mxu1 %vm877_vm6, %v3281_v51 }
 0x3ae   : > { %2780 = vmatpush3.bf16.msra.mxu1 %v949_v59  ;;  %2781 = vmatprep.mubr.msk.bf16.mxu1 %vm3071_vm4, %v3070_v34 }
 0x3af   : > { %2785 = vmatprep.subr.bf16.mxu1 %v3070_v34 }
 0x480   : > { %v918_v60 = vpop.f32.mrb[4].mxu1 }
 0x481   : > { %v924_v61 = vmul.f32 0.35355338, %v918_v60  ;;  %v2777_v62 = vpop.f32.mrb[5].mxu1 }
 0x482   : > { %v921_v63 = vpop.f32.mrb[6].mxu1 }
 0x483   : > { %v2778_v0 = vpop.f32.mrb[7].mxu1  ;;  %v926_v1 = vsel %vm925_vm9, %v924_v61, -inf }
 0x484   : > { %927 = vmax.xlane.f32.xlu1 %v926_v1 }
 0x511   : > { %v928_v2 = vpop.xlane.xlu1 %927 }
 0x512   : > { %v929_v3 = vsub.f32 %v924_v61, %v928_v2 }
 0x514   : > { %v930_v4 = vmul.f32 1.442695, %v929_v3 }
 0x516   : > { %3017 = vpow2.f32 %v930_v4 }
 0x520   : > { %v3018_v5 = vpop.eup %3017 }
 0x521   : > { %v932_v6 = vsel %vm925_vm9, %v3018_v5, 0.0 }
 0x522   : > { %933 = vadd.xlane.f32.xlu0 %v932_v6 }
 0x538   : > { %995 = vrot.lane.b32.xlu0 %v3281_v51, %s3075_s2 }
 0x53c   : > { %993 = vrot.lane.b32.xlu0 %v3281_v51, %s3667_s23  ;;  %s3681_s23 = smov 56  }
 0x5af   : > { %v934_v7 = vpop.xlane.xlu0 %933 }
 0x5b0   : > { %3019 = vrcp.f32 %v934_v7 }
 0x5b3   : > { %v996_v10 = vpop.permute.xlu0 %995 }
 0x5b4   : > { %v1001_v12 = vsel %vm877_vm6, %v996_v10, 0 }
 0x5b7   : > { %v994_v13 = vpop.permute.xlu0 %993 }
 0x5ba   : > { %v3020_v8 = vpop.eup %3019 }
 0x5bb   : > { %v936_v9 = vmul.f32 %v3020_v8, %v3018_v5 }
 0x5bd   : > { %v937_v11 = vpack.c.bf16 %v936_v9, %v936_v9 }
 0x5bf   : > { %2782 = vmatmul.mubr.msk.bf16.vlgmr.msra.gmra.mrb[8].mxu1 %vm940_vm10, %v937_v11 }
 0x5c0   : > { %2786 = vmatpush3.bf16.xpose.msra.mxu1 %v1001_v12  ;;  %2787 = vmatprep.mubr.msk.bf16.mxu1 %vm3071_vm4, %v3070_v34 }
 0x5c1   : > { %2791 = vmatprep.subr.bf16.mxu1 %v3070_v34 }
 0x5c7   : > { %2788 = vmatmul.mubr.msk.bf16.vlgmr.msra.gmra.mrb[12].mxu1 %vm877_vm6, %v994_v13 }
 0x5c8   : > { %2793 = vmatprep.mubr.msk.bf16.mxu1 %vm3071_vm4, %v3070_v34 }
 0x692   : > { %v985_v14 = vpop.f32.mrb[8].mxu1 }
 0x693   : > { %992 = vst.msk [vmem:[#allocation3] sm:$0x1f] %vm991_vm11, %v985_v14  ;;  %v2783_v15 = vpop.f32.mrb[9].mxu1 }
 0x694   : > { %v988_v16 = vpop.f32.mrb[10].mxu1 }
 0x695   : > { %v2784_v17 = vpop.f32.mrb[11].mxu1 }
 0x69a   : > { %v1037_v18 = vpop.f32.mrb[12].mxu1 }
 0x69b   : > { %v1043_v19 = vmul.f32 0.35355338, %v1037_v18  ;;  %v2789_v20 = vpop.f32.mrb[13].mxu1 }
 0x69c   : > { %v1040_v21 = vpop.f32.mrb[14].mxu1 }
 0x69d   : > { %v2790_v22 = vpop.f32.mrb[15].mxu1  ;;  %v1044_v23 = vsel %vm925_vm9, %v1043_v19, -inf }
 0x69e   : > { %1045 = vmax.xlane.f32.xlu1 %v1044_v23 }
 0x6af   : > { %1056 = vrot.lane.b32.xlu1 %v3281_v51, %s3658_s24  ;;  %s3659_s24 = smov 16  }
 0x6b3   : > { %1112 = vrot.lane.b32.xlu1 %v3281_v51, %s3078_s25 }
 0x6b7   : > { %1110 = vrot.lane.b32.xlu1 %v3281_v51, %s3666_s3  ;;  %s3682_s3 = smov 40  }
 0x72b   : > { %v1046_v24 = vpop.xlane.xlu1 %1045 }
 0x72c   : > { %v1047_v25 = vsub.f32 %v1043_v19, %v1046_v24  ;;  %v2989_v24 = vld [vmem:[%s3646_s9] sm:$0xff]  }
 0x72e   : > { %v1048_v27 = vmul.f32 1.442695, %v1047_v25  ;;  %v2990_v25 = vld [vmem:[%s3646_s9 + $0x8] sm:$0xff]  }
 0x72f   : > { %v1057_v28 = vpop.permute.xlu1 %1056 }
 0x730   : > { %3021 = vpow2.f32 %v1048_v27  ;;  %v1062_v29 = vand.u32 %v1057_v28, %v3289_v57 }
 0x732   : > { %2792 = vmatpush3.bf16.msra.mxu1 %v1062_v29 }
 0x733   : > { %2797 = vmatprep.subr.bf16.mxu1 %v3070_v34  ;;  %v1113_v36 = vpop.permute.xlu1 %1112 }
 0x734   : > { %v1118_v38 = vsel %vm877_vm6, %v1113_v36, 0  ;;  %v2607_v36 = vld [vmem:[%s3647_s10] ss:$0 sm:$0xff] }
 0x737   : > { %v1111_v40 = vpop.permute.xlu1 %1110 }
 0x73a   : > { %v3022_v30 = vpop.eup %3021 }
 0x73b   : > { %v1050_v31 = vsel %vm925_vm9, %v3022_v30, 0.0 }
 0x73c   : > { %1051 = vadd.xlane.f32.xlu0 %v1050_v31 }
 0x752   : > { %1173 = vrot.lane.b32.xlu0 %v3281_v51, %s3662_s26  ;;  %s3683_s26 = smov 8  }
 0x7c9   : > { %v1052_v32 = vpop.xlane.xlu0 %1051 }
 0x7ca   : > { %3023 = vrcp.f32 %v1052_v32 }
 0x7cd   : > { %v1174_v39 = vpop.permute.xlu0 %1173 }
 0x7ce   : > { %v1179_v41 = vand.u32 %v1174_v39, %v3289_v57 }
 0x7d4   : > { %v3024_v33 = vpop.eup %3023 }
 0x7d5   : > { %v1054_v35 = vmul.f32 %v3024_v33, %v3022_v30 }
 0x7d7   : > { %v1055_v37 = vpack.c.bf16 %v1054_v35, %v1054_v35 }
 0x7d9   : > { %2794 = vmatmul.mubr.msk.bf16.vlgmr.msra.gmra.mrb[16].mxu1 %vm940_vm10, %v1055_v37 }
 0x7da   : > { %2798 = vmatpush3.bf16.xpose.msra.mxu1 %v1118_v38  ;;  %2799 = vmatprep.mubr.msk.bf16.mxu1 %vm3071_vm4, %v3070_v34 }
 0x7db   : > { %2803 = vmatprep.subr.bf16.mxu1 %v3070_v34 }
 0x7e1   : > { %2800 = vmatmul.mubr.msk.bf16.vlgmr.msra.gmra.mrb[20].mxu1 %vm877_vm6, %v1111_v40 }
 0x7e2   : > { %2804 = vmatpush3.bf16.msra.mxu1 %v1179_v41  ;;  %2805 = vmatprep.mubr.msk.bf16.mxu1 %vm3071_vm4, %v3070_v34 }
 0x7e3   : > { %2809 = vmatprep.subr.bf16.mxu1 %v3070_v34 }
 0x8ac   : > { %v1098_v42 = vpop.f32.mrb[16].mxu1 }
 0x8ad   : > { %v2795_v43 = vpop.f32.mrb[17].mxu1 }
 0x8ae   : > { %v1101_v44 = vpop.f32.mrb[18].mxu1 }
 0x8af   : > { %v2796_v45 = vpop.f32.mrb[19].mxu1 }
 0x8b4   : > { %v1154_v46 = vpop.f32.mrb[20].mxu1 }
 0x8b5   : > { %v1160_v47 = vmul.f32 0.35355338, %v1154_v46  ;;  %v2801_v48 = vpop.f32.mrb[21].mxu1 }
 0x8b6   : > { %v1157_v49 = vpop.f32.mrb[22].mxu1  ;;  %v2992_v48 = vld [vmem:[%s3650_s13 + $0x8] sm:$0xff]  }
 0x8b7   : > { %v2802_v50 = vpop.f32.mrb[23].mxu1  ;;  %v1161_v52 = vsel %vm925_vm9, %v1160_v47, -inf  ;;  %v2993_v49 = vld [vmem:[%s3652_s15] sm:$0xff]  }
 0x8b8   : > { %1162 = vmax.xlane.f32.xlu1 %v1161_v52 }
 0x945   : > { %v1163_v53 = vpop.xlane.xlu1 %1162 }
 0x946   : > { %v1164_v54 = vsub.f32 %v1160_v47, %v1163_v53 }
 0x948   : > { %v1165_v55 = vmul.f32 1.442695, %v1164_v54 }
 0x94a   : > { %3025 = vpow2.f32 %v1165_v55  ;;  %v2608_v55 = vld [vmem:[%s3648_s11] ss:$0 sm:$0xff] }
 0x954   : > { %v3026_v56 = vpop.eup %3025 }
 0x955   : > { %v1167_v58 = vsel %vm925_vm9, %v3026_v56, 0.0 }
 0x956   : > { %1168 = vadd.xlane.f32.xlu0 %v1167_v58  ;;  %v2609_v58 = vld [vmem:[%s3649_s12] ss:$0 sm:$0xff] }
 0x96c   : > { %1229 = vrot.lane.b32.xlu0 %v3281_v51, %s3665_s27  ;;  %s3684_s27 = smov 16  }
 0x970   : > { %1227 = vrot.lane.b32.xlu0 %v3281_v51, %s3663_s28  ;;  %s3664_s28 = smov 24  }
 0x9e3   : > { %v1169_v59 = vpop.xlane.xlu0 %1168 }
 0x9e4   : > { %3027 = vrcp.f32 %v1169_v59 }
 0x9e7   : > { %v1230_v62 = vpop.permute.xlu0 %1229 }
 0x9e8   : > { %v1235_v0 = vsel %vm877_vm6, %v1230_v62, 0  ;;  %v2994_v62 = vld [vmem:[%s3652_s15 + $0x8] sm:$0xff]  }
 0x9eb   : > { %v1228_v1 = vpop.permute.xlu0 %1227 }
 0x9ee   : > { %v3028_v60 = vpop.eup %3027 }
 0x9ef   : > { %v1171_v61 = vmul.f32 %v3028_v60, %v3026_v56 }
 0x9f1   : > { %v1172_v63 = vpack.c.bf16 %v1171_v61, %v1171_v61 }
 0x9f3   : > { %2806 = vmatmul.mubr.msk.bf16.vlgmr.msra.gmra.mrb[24].mxu1 %vm940_vm10, %v1172_v63  ;;  %v2995_v63 = vld [vmem:[%s3652_s15 + $0x10] sm:$0xff]  }
 0x9f4   : > { %2810 = vmatpush3.bf16.xpose.msra.mxu1 %v1235_v0  ;;  %2811 = vmatprep.mubr.msk.bf16.mxu1 %vm3071_vm4, %v3070_v34  ;;  %v2996_v0 = vld [vmem:[%s3652_s15 + $0x18] sm:$0xff]  }
 0x9f5   : > { %2815 = vmatprep.subr.bf16.mxu1 %v3070_v34 }
 0x9fb   : > { %2812 = vmatmul.mubr.msk.bf16.vlgmr.msra.gmra.mrb[28].mxu1 %vm877_vm6, %v1228_v1  ;;  %v2997_v1 = vld [vmem:[%s3652_s15 + $0x20] sm:$0xff]  }
 0x9fc   : > { %2817 = vmatprep.mubr.msk.bf16.mxu1 %vm3071_vm4, %v3070_v34 }
 0xac6   : > { %v1215_v2 = vpop.f32.mrb[24].mxu1 }
 0xac7   : > { %v2807_v3 = vpop.f32.mrb[25].mxu1 }
 0xac8   : > { %v1218_v4 = vpop.f32.mrb[26].mxu1  ;;  %v2999_v3 = vld [vmem:[%s3652_s15 + $0x30] sm:$0xff]  }
 0xac9   : > { %v2808_v5 = vpop.f32.mrb[27].mxu1  ;;  %v3000_v4 = vld [vmem:[%s3652_s15 + $0x38] sm:$0xff]  }
 0xaca   : > { %v2610_v5 = vld [vmem:[%s3651_s14] ss:$0 sm:$0xff] }
 0xace   : > { %v1271_v6 = vpop.f32.mrb[28].mxu1 }
 0xacf   : > { %v1277_v7 = vmul.f32 0.35355338, %v1271_v6  ;;  %v2813_v8 = vpop.f32.mrb[29].mxu1 }
 0xad0   : > { %v1274_v9 = vpop.f32.mrb[30].mxu1 }
 0xad1   : > { %v2814_v10 = vpop.f32.mrb[31].mxu1  ;;  %v1278_v11 = vsel %vm925_vm9, %v1277_v7, -inf }
 0xad2   : > { %1279 = vmax.xlane.f32.xlu1 %v1278_v11 }
 0xae3   : > { %1290 = vrot.lane.b32.xlu1 %v3281_v51, %s3661_s29  ;;  %s2574_s29 = sshll.u32 %s3687_s30, 3 }
 0xae7   : > { %1105 = vrot.lane.b32.xlu1 %v1098_v42, %s3660_s20 }
 0xaeb   : > { %1222 = vrot.lane.b32.xlu1 %v1215_v2, %s3659_s24  ;;  %v2998_v2 = vld [vmem:[%s3652_s15 + $0x28] sm:$0xff]   ;;  %s3678_s24 = smov 72  }
 0xb5f   : > { %v1280_v12 = vpop.xlane.xlu1 %1279 }
 0xb60   : > { %v1281_v13 = vsub.f32 %v1277_v7, %v1280_v12 }
 0xb62   : > { %v1282_v14 = vmul.f32 1.442695, %v1281_v13 }
 0xb63   : > { %v1291_v15 = vpop.permute.xlu1 %1290 }
 0xb64   : > { %3029 = vpow2.f32 %v1282_v14  ;;  %v1296_v16 = vand.u32 %v1291_v15, %v3289_v57 }
 0xb66   : > { %2816 = vmatpush3.bf16.msra.mxu1 %v1296_v16 }
 0xb67   : > { %v1106_v17 = vpop.permute.xlu1 %1105  ;;  %2821 = vmatprep.subr.bf16.mxu1 %v3070_v34 }
 0xb68   : > { %1109 = vst.msk [vmem:[#allocation3] sm:$0x1f] %vm1108_vm12, %v1106_v17 }
 0xb6b   : > { %v1223_v51 = vpop.permute.xlu1 %1222 }
 0xb6c   : > { %1226 = vst.msk [vmem:[#allocation3] sm:$0x1f] %vm1225_vm13, %v1223_v51 }
 0xb6e   : > { %v3030_v18 = vpop.eup %3029 }
 0xb6f   : > { %v1284_v19 = vsel %vm925_vm9, %v3030_v18, 0.0 }
 0xb70   : > { %1285 = vadd.xlane.f32.xlu0 %v1284_v19 }
 0xbfd   : > { %v1286_v20 = vpop.xlane.xlu0 %1285 }
 0xbfe   : > { %3031 = vrcp.f32 %v1286_v20  ;;  %v2614_v20 = vld [vmem:[%s3653_s16] ss:$0 sm:$0xff] }
 0xc08   : > { %v3032_v21 = vpop.eup %3031 }
 0xc09   : > { %v1288_v22 = vmul.f32 %v3032_v21, %v3030_v18 }
 0xc0b   : > { %v1289_v23 = vpack.c.bf16 %v1288_v22, %v1288_v22 }
 0xc0d   : > { %2818 = vmatmul.mubr.msk.bf16.vlgmr.msra.gmra.mrb[32].mxu1 %vm940_vm10, %v1289_v23 }
 0xc0e   : > { %2825 = vmatprep.mubr.msk.bf16.mxu1 %vm3071_vm4, %v3070_v34  ;;  %2822 = vmatpush3.bf16.msra.mxu1 %v2989_v24 }
 0xc0f   : > { %2823 = vmatprep.subr.bf16.mxu1 %v3070_v34 }
 0xc12   : > { %2824 = vmatpush3.bf16.msra.mxu1 %v2990_v25 }
 0xc13   : > { %2837 = vmatprep.subr.bf16.mxu1 %v3070_v34 }
 0xce0   : > { %v1332_v27 = vpop.f32.mrb[32].mxu1 }
 0xce1   : > { %1339 = vrot.lane.b32.xlu1 %v1332_v27, %s3664_s28  ;;  %v2819_v28 = vpop.f32.mrb[33].mxu1 }
 0xce2   : > { %v1335_v29 = vpop.f32.mrb[34].mxu1 }
 0xce3   : > { %v2820_v30 = vpop.f32.mrb[35].mxu1 }
 0xd53   : > { %v1340_v31 = vpop.permute.xlu1 %1339 }
 0xd54   : > { %1343 = vst.msk [vmem:[#allocation3] sm:$0x1f] %vm1342_vm14, %v1340_v31 }
 0xd5b   : > { %v1344_v32 = vld [vmem:[#allocation3] sm:$0x1f] }
 0xd5c   : > { %v1345_v33 = vpack.c.bf16 %v1344_v32, %v1344_v32 }
 0xd5e   : > { %2826 = vmatmul.mubr.msk.bf16.vlgmr.msra.gmra.mrb[36].mxu1 %vm829_vm5, %v1345_v33 }
 0xd5f   : > { %2853 = vmatprep.mubr.msk.bf16.mxu1 %vm3071_vm4, %v3070_v34  ;;  %2838 = vmatpush3.bf16.msra.mxu1 %v2993_v49 }
 0xd60   : > { %2839 = vmatprep.subr.bf16.mxu1 %v3070_v34 }
 0xd63   : > { %2840 = vmatpush3.bf16.msra.mxu1 %v2994_v62 }
 0xd64   : > { %2841 = vmatprep.subr.bf16.mxu1 %v3070_v34 }
 0xd67   : > { %2842 = vmatpush3.bf16.msra.mxu1 %v2995_v63 }
 0xd68   : > { %2843 = vmatprep.subr.bf16.mxu1 %v3070_v34 }
 0xd6b   : > { %2844 = vmatpush3.bf16.msra.mxu1 %v2996_v0 }
 0xd6c   : > { %2845 = vmatprep.subr.bf16.mxu1 %v3070_v34 }
 0xd6f   : > { %2846 = vmatpush3.bf16.msra.mxu1 %v2997_v1 }
 0xd70   : > { %2847 = vmatprep.subr.bf16.mxu1 %v3070_v34 }
 0xd73   : > { %2848 = vmatpush3.bf16.msra.mxu1 %v2998_v2 }
 0xd74   : > { %2849 = vmatprep.subr.bf16.mxu1 %v3070_v34 }
 0xd77   : > { %2850 = vmatpush3.bf16.msra.mxu1 %v2999_v3 }
 0xd78   : > { %2851 = vmatprep.subr.bf16.mxu1 %v3070_v34 }
 0xd7b   : > { %2852 = vmatpush3.bf16.msra.mxu1 %v3000_v4 }
 0xd7c   : > { %2883 = vmatprep.subr.bf16.mxu1 %v3070_v34 }
 0xe31   : > { %v1395_v35 = vpop.f32.mrb[36].mxu1 }
 0xe32   : > { %v1401_v37 = vadd.f32 %v1395_v35, %v3249_v26  ;;  %v2827_v38 = vpop.f32.mrb[37].mxu1  ;;  %v2991_v26 = vld [vmem:[%s3650_s13] sm:$0xff]   ;;  %v3001_v35 = vld [vmem:[%s3644_s7 + $0x10] sm:$0xff]  }
 0xe33   : > { %v1398_v39 = vpop.f32.mrb[38].mxu1  ;;  %2830 = vmatpush3.bf16.msra.mxu0 %v2991_v26 }
 0xe34   : > { %v3378_v40 = vadd.f32 %v2607_v36, %v1401_v37  ;;  %v2828_v41 = vpop.f32.mrb[39].mxu1  ;;  %2831 = vmatprep.subr.bf16.mxu0 %v3070_v34  ;;  %v3002_v36 = vld [vmem:[%s3644_s7 + $0x18] sm:$0xff]  }
 0xe35   : > { %v2625_v41 = vld [vmem:[%s3642_s5 + $0x1] ss:$0 sm:$0xff] }
 0xe36   : > { %v1412_v42 = vsel %vm772_vm3, %v3378_v40, 0.0 }
 0xe37   : > { %1413 = vadd.xlane.f32.xlu0 %v1412_v42  ;;  %2832 = vmatpush3.bf16.msra.mxu0 %v2992_v48 }
 0xe38   : > { %2857 = vmatprep.subr.bf16.mxu0 %v3070_v34 }
 0xec4   : > { %v1414_v43 = vpop.xlane.xlu0 %1413 }
 0xec5   : > { %v1415_v44 = vmul.f32 0.03125, %v1414_v43  ;;  %v2626_v43 = vld [vmem:[%s3643_s6 + $0x1] ss:$0 sm:$0xff] }
 0xec7   : > { %v1416_v45 = vsub.f32 %v3378_v40, %v1415_v44 }
 0xec9   : > { %v1417_v46 = vmul.f32 %v1416_v45, %v1416_v45 }
 0xecb   : > { %v1418_v47 = vsel %vm772_vm3, %v1417_v46, 0.0 }
 0xecc   : > { %1419 = vadd.xlane.f32.xlu1 %v1418_v47  ;;  %v2636_v47 = vld [vmem:[%s3645_s8 + $0x1] ss:$0 sm:$0xff] }
 0xf59   : > { %v1420_v50 = vpop.xlane.xlu1 %1419 }
 0xf5a   : > { %v1421_v52 = vmul.f32 0.03125, %v1420_v50 }
 0xf5c   : > { %v1422_v53 = vadd.f32 1e-06, %v1421_v52 }
 0xf5e   : > { %3033 = vrsqrt.f32 %v1422_v53 }
 0xf68   : > { %v3034_v54 = vpop.eup %3033 }
 0xf69   : > { %v1424_v56 = vmul.f32 %v3034_v54, %v1416_v45 }
 0xf6b   : > { %v1431_v59 = vmul.f32 %v2608_v55, %v1424_v56 }
 0xf6d   : > { %v1438_v60 = vadd.f32 %v2609_v58, %v1431_v59 }
 0xf6f   : > { %v1461_v61 = vpack.c.bf16 %v1438_v60, %v1438_v60 }
 0xf71   : > { %2834 = vmatmul.mubr.msk.bf16.vlgmr.msra.gmra.mrb[4].mxu0 %vm829_vm5, %v1461_v61 }
 0xf72   : > { %2861 = vmatprep.mubr.msk.bf16.mxu0 %vm3071_vm4, %v3070_v34  ;;  %2858 = vmatpush3.bf16.msra.mxu0 %v3001_v35 }
 0xf73   : > { %2859 = vmatprep.subr.bf16.mxu0 %v3070_v34 }
 0xf76   : > { %2860 = vmatpush3.bf16.msra.mxu0 %v3002_v36 }
 0xf77   : > { %2865 = vmatprep.subr.bf16.mxu0 %v3070_v34 }
0x1044   : > { %v1517_v6 = vpop.f32.mrb[4].mxu0 }
0x1045   : > { %v1518_v7 = vadd.f32 %v2610_v5, %v1517_v6  ;;  %v2835_v8 = vpop.f32.mrb[5].mxu0 }
0x1046   : > { %v1520_v9 = vpop.f32.mrb[6].mxu0 }
0x1047   : > { %v1524_v10 = vmul.f32 0.044715, %v1518_v7  ;;  %v2836_v11 = vpop.f32.mrb[7].mxu0  ;;  %v1523_v17 = vmul.f32 0.5, %v1518_v7 }
0x1049   : > { %v1525_v12 = vmul.f32 %v1524_v10, %v1518_v7 }
0x104b   : > { %v1526_v13 = vmul.f32 %v1525_v12, %v1518_v7 }
0x104d   : > { %v1527_v14 = vadd.f32 %v1526_v13, %v1518_v7 }
0x104f   : > { %v1528_v15 = vmul.f32 0.7978846, %v1527_v14 }
0x1051   : > { %3035 = vtanh.f32 %v1528_v15 }
0x105b   : > { %v3036_v16 = vpop.eup %3035 }
0x105c   : > { %v1530_v51 = vadd.f32 1.0, %v3036_v16 }
0x105e   : > { %v1531_v18 = vmul.f32 %v1530_v51, %v1523_v17 }
0x1060   : > { %v1532_v19 = vpack.c.bf16 %v1531_v18, %v1531_v18 }
0x1062   : > { %2854 = vmatmul.mubr.bf16.vlgmr.msra.gmra.mrb[40].mxu1 %v1532_v19 }
0x1063   : > { %2885 = vmatprep.mubr.msk.bf16.mxu1 %vm3071_vm4, %v3070_v34 }
0x1135   : > { %v1621_v21 = vpop.f32.mrb[40].mxu1 }
0x1136   : > { %v1622_v22 = vadd.f32 %v2614_v20, %v1621_v21  ;;  %v2855_v23 = vpop.f32.mrb[41].mxu1 }
0x1137   : > { %v1624_v24 = vpop.f32.mrb[42].mxu1 }
0x1138   : > { %v3442_v25 = vadd.f32 %v1622_v22, %v3378_v40  ;;  %v2856_v27 = vpop.f32.mrb[43].mxu1 }
0x113a   : > { %v1632_v28 = vsel %vm772_vm3, %v3442_v25, 0.0 }
0x113b   : > { %1633 = vadd.xlane.f32.xlu0 %v1632_v28 }
0x11c8   : > { %v1634_v29 = vpop.xlane.xlu0 %1633 }
0x11c9   : > { %v1635_v30 = vmul.f32 0.03125, %v1634_v29 }
0x11cb   : > { %v1636_v31 = vsub.f32 %v3442_v25, %v1635_v30 }
0x11cd   : > { %v1637_v32 = vmul.f32 %v1636_v31, %v1636_v31 }
0x11cf   : > { %v1638_v33 = vsel %vm772_vm3, %v1637_v32, 0.0 }
0x11d0   : > { %1639 = vadd.xlane.f32.xlu0 %v1638_v33 }
0x125d   : > { %v1640_v37 = vpop.xlane.xlu0 %1639 }
0x125e   : > { %v1641_v38 = vmul.f32 0.03125, %v1640_v37 }
0x1260   : > { %v1642_v39 = vadd.f32 1e-06, %v1641_v38 }
0x1262   : > { %3037 = vrsqrt.f32 %v1642_v39 }
0x126c   : > { %v3038_v40 = vpop.eup %3037 }
0x126d   : > { %v1644_v42 = vmul.f32 %v3038_v40, %v1636_v31 }
0x126f   : > { %v1651_v44 = vmul.f32 %v2625_v41, %v1644_v42 }
0x1271   : > { %v1658_v45 = vadd.f32 %v2626_v43, %v1651_v44 }
0x1273   : > { %v1671_v46 = vpack.c.bf16 %v1658_v45, %v1658_v45 }
0x1275   : > { %2862 = vmatmul.mubr.msk.bf16.vlgmr.msra.gmra.mrb[8].mxu0 %vm829_vm5, %v1671_v46 }
0x1276   : > { %2867 = vmatprep.mubr.msk.bf16.mxu0 %vm3071_vm4, %v3070_v34 }
0x1348   : > { %v1727_v26 = vpop.f32.mrb[8].mxu0 }
0x1349   : > { %v1728_v48 = vadd.f32 %v2636_v47, %v1727_v26  ;;  %v2863_v49 = vpop.f32.mrb[9].mxu0 }
0x134a   : > { %v1730_v50 = vpop.f32.mrb[10].mxu0 }
0x134b   : > { %v3468_v52 = vpack.c.bf16 %v1728_v48, %v1728_v48  ;;  %v2864_v53 = vpop.f32.mrb[11].mxu0 }
0x134d   : > { %1796 = vrot.lane.b32.xlu1 %v3468_v52, %s3072_s21  ;;  %1735 = vrot.lane.b32.xlu0 %v3468_v52, %s3073_s22  ;;  %s3676_s21 = smov 120   ;;  %s3677_s22 = smov 112  }
0x13bf   : > { %v1736_v54 = vpop.permute.xlu0 %1735  ;;  %v1797_v56 = vpop.permute.xlu1 %1796 }
0x13c0   : > { %v1741_v55 = vsel %vm877_vm6, %v1736_v54, 0  ;;  %v1802_v58 = vand.u32 %v1797_v56, %v3289_v57 }
0x13c1   : > { %2866 = vmatpush3.bf16.xpose.msra.mxu0 %v1741_v55 }
0x13c2   : > { %2871 = vmatprep.subr.bf16.mxu0 %v3070_v34 }
0x13c8   : > { %2868 = vmatmul.mubr.msk.bf16.vlgmr.msra.gmra.mrb[12].mxu0 %vm877_vm6, %v3468_v52 }
0x13c9   : > { %2872 = vmatpush3.bf16.msra.mxu0 %v1802_v58  ;;  %2873 = vmatprep.mubr.msk.bf16.mxu0 %vm3071_vm4, %v3070_v34 }
0x13ca   : > { %2877 = vmatprep.subr.bf16.mxu0 %v3070_v34 }
0x149b   : > { %v1777_v59 = vpop.f32.mrb[12].mxu0 }
0x149c   : > { %v1783_v60 = vmul.f32 0.35355338, %v1777_v59  ;;  %v2869_v61 = vpop.f32.mrb[13].mxu0 }
0x149d   : > { %v1780_v62 = vpop.f32.mrb[14].mxu0 }
0x149e   : > { %v2870_v63 = vpop.f32.mrb[15].mxu0  ;;  %v1784_v0 = vsel %vm925_vm9, %v1783_v60, -inf }
0x149f   : > { %1785 = vmax.xlane.f32.xlu0 %v1784_v0 }
0x14b5   : > { %1963 = vrot.lane.b32.xlu0 %v3468_v52, %s3078_s25  ;;  %s3679_s25 = smov 104  }
0x152c   : > { %v1786_v1 = vpop.xlane.xlu0 %1785 }
0x152d   : > { %v1787_v2 = vsub.f32 %v1783_v60, %v1786_v1 }
0x152f   : > { %v1788_v3 = vmul.f32 1.442695, %v1787_v2 }
0x1530   : > { %v1964_v13 = vpop.permute.xlu0 %1963 }
0x1531   : > { %3039 = vpow2.f32 %v1788_v3  ;;  %v1969_v15 = vsel %vm877_vm6, %v1964_v13, 0 }
0x153b   : > { %v3040_v4 = vpop.eup %3039 }
0x153c   : > { %v1790_v5 = vsel %vm925_vm9, %v3040_v4, 0.0 }
0x153d   : > { %1791 = vadd.xlane.f32.xlu1 %v1790_v5 }
0x154e   : > { %1847 = vrot.lane.b32.xlu1 %v3468_v52, %s3075_s2  ;;  %s3680_s2 = smov 48  }
0x1552   : > { %1845 = vrot.lane.b32.xlu1 %v3468_v52, %s3676_s21 }
0x1556   : > { %1961 = vrot.lane.b32.xlu1 %v3468_v52, %s3677_s22  ;;  %s3685_s22 = smov 24  }
0x155a   : > { %2079 = vrot.lane.b32.xlu1 %v3468_v52, %s3678_s24 }
0x155e   : > { %2077 = vrot.lane.b32.xlu1 %v3468_v52, %s3679_s25  ;;  %s600_s25 = scalar_lea.vmem %s3656_s19, %s2574_s29 }
0x15ca   : > { %v1792_v6 = vpop.xlane.xlu1 %1791 }
0x15cb   : > { %3041 = vrcp.f32 %v1792_v6 }
0x15ce   : > { %v1848_v8 = vpop.permute.xlu1 %1847 }
0x15cf   : > { %v1853_v11 = vsel %vm877_vm6, %v1848_v8, 0 }
0x15d2   : > { %v1846_v12 = vpop.permute.xlu1 %1845 }
0x15d5   : > { %v3042_v7 = vpop.eup %3041 }
0x15d6   : > { %v1794_v9 = vmul.f32 %v3042_v7, %v3040_v4  ;;  %v1962_v14 = vpop.permute.xlu1 %1961 }
0x15d8   : > { %v1795_v10 = vpack.c.bf16 %v1794_v9, %v1794_v9 }
0x15da   : > { %2874 = vmatmul.mubr.msk.bf16.vlgmr.msra.gmra.mrb[16].mxu0 %vm940_vm10, %v1795_v10  ;;  %v2080_v16 = vpop.permute.xlu1 %2079 }
0x15db   : > { %2878 = vmatpush3.bf16.xpose.msra.mxu0 %v1853_v11  ;;  %2879 = vmatprep.mubr.msk.bf16.mxu0 %vm3071_vm4, %v3070_v34  ;;  %v2085_v17 = vsel %vm877_vm6, %v2080_v16, 0 }
0x15dc   : > { %2889 = vmatprep.subr.bf16.mxu0 %v3070_v34 }
0x15de   : > { %v2078_v51 = vpop.permute.xlu1 %2077 }
0x15e2   : > { %2880 = vmatmul.mubr.msk.bf16.vlgmr.msra.gmra.mrb[20].mxu0 %vm877_vm6, %v1846_v12 }
0x15e3   : > { %2890 = vmatpush3.bf16.xpose.msra.mxu0 %v1969_v15  ;;  %2891 = vmatprep.mubr.msk.bf16.mxu0 %vm3071_vm4, %v3070_v34 }
0x15e4   : > { %2901 = vmatprep.subr.bf16.mxu0 %v3070_v34 }
0x15ea   : > { %2892 = vmatmul.mubr.msk.bf16.vlgmr.msra.gmra.mrb[24].mxu0 %vm877_vm6, %v1962_v14 }
0x15eb   : > { %2902 = vmatpush3.bf16.xpose.msra.mxu0 %v2085_v17  ;;  %2903 = vmatprep.mubr.msk.bf16.mxu0 %vm3071_vm4, %v3070_v34 }
0x15ec   : > { %2913 = vmatprep.subr.bf16.mxu0 %v3070_v34 }
0x15f2   : > { %2904 = vmatmul.mubr.msk.bf16.vlgmr.msra.gmra.mrb[28].mxu0 %vm877_vm6, %v2078_v51 }
0x15f3   : > { %2917 = vmatprep.mubr.msk.bf16.mxu0 %vm3071_vm4, %v3070_v34 }
0x16ad   : > { %v1838_v18 = vpop.f32.mrb[16].mxu0 }
0x16ae   : > { %1844 = vst.msk [vmem:[#allocation3] sm:$0x1f] %vm991_vm11, %v1838_v18  ;;  %v2875_v19 = vpop.f32.mrb[17].mxu0 }
0x16af   : > { %v1841_v20 = vpop.f32.mrb[18].mxu0  ;;  %v3003_v19 = vld [vmem:[%s3646_s9 + $0x10] sm:$0xff]  }
0x16b0   : > { %v2876_v21 = vpop.f32.mrb[19].mxu0  ;;  %2914 = vmatpush3.bf16.msra.mxu0 %v3003_v19  ;;  %v3004_v20 = vld [vmem:[%s3646_s9 + $0x18] sm:$0xff]  }
0x16b1   : > { %2915 = vmatprep.subr.bf16.mxu0 %v3070_v34 }
0x16b4   : > { %2916 = vmatpush3.bf16.msra.mxu0 %v3004_v20 }
0x16b5   : > { %v1889_v22 = vpop.f32.mrb[20].mxu0  ;;  %2929 = vmatprep.subr.bf16.mxu0 %v3070_v34 }
0x16b6   : > { %v1895_v23 = vmul.f32 0.35355338, %v1889_v22  ;;  %v2881_v24 = vpop.f32.mrb[21].mxu0 }
0x16b7   : > { %v1892_v27 = vpop.f32.mrb[22].mxu0 }
0x16b8   : > { %v2882_v28 = vpop.f32.mrb[23].mxu0  ;;  %v1896_v29 = vsel %vm925_vm9, %v1895_v23, -inf }
0x16b9   : > { %1897 = vmax.xlane.f32.xlu1 %v1896_v29 }
0x16bd   : > { %v2005_v30 = vpop.f32.mrb[24].mxu0 }
0x16be   : > { %v2011_v31 = vmul.f32 0.35355338, %v2005_v30  ;;  %v2893_v32 = vpop.f32.mrb[25].mxu0 }
0x16bf   : > { %v2008_v33 = vpop.f32.mrb[26].mxu0 }
0x16c0   : > { %v2894_v35 = vpop.f32.mrb[27].mxu0  ;;  %v2012_v36 = vsel %vm925_vm9, %v2011_v31, -inf  ;;  %v2652_v33 = vld [vmem:[%s3647_s10 + $0x1] ss:$0 sm:$0xff] }
0x16c1   : > { %2013 = vmax.xlane.f32.xlu0 %v2012_v36 }
0x16c5   : > { %v2121_v37 = vpop.f32.mrb[28].mxu0 }
0x16c6   : > { %v2127_v38 = vmul.f32 0.35355338, %v2121_v37  ;;  %v2905_v39 = vpop.f32.mrb[29].mxu0 }
0x16c7   : > { %v2124_v40 = vpop.f32.mrb[30].mxu0 }
0x16c8   : > { %v2906_v41 = vpop.f32.mrb[31].mxu0  ;;  %v2128_v42 = vsel %vm925_vm9, %v2127_v38, -inf }
0x16c9   : > { %2129 = vmax.xlane.f32.xlu1 %v2128_v42 }
0x1746   : > { %v1898_v43 = vpop.xlane.xlu1 %1897 }
0x1747   : > { %v1899_v44 = vsub.f32 %v1895_v23, %v1898_v43 }
0x1749   : > { %v1900_v45 = vmul.f32 1.442695, %v1899_v44 }
0x174b   : > { %3043 = vpow2.f32 %v1900_v45 }
0x174e   : > { %v2014_v46 = vpop.xlane.xlu0 %2013 }
0x174f   : > { %v2015_v47 = vsub.f32 %v2011_v31, %v2014_v46  ;;  %v3006_v46 = vld [vmem:[%s3650_s13 + $0x18] sm:$0xff]  }
0x1751   : > { %v2016_v26 = vmul.f32 1.442695, %v2015_v47  ;;  %v3007_v47 = vld [vmem:[%s3652_s15 + $0x40] sm:$0xff]  }
0x1753   : > { %3045 = vpow2.f32 %v2016_v26 }
0x1755   : > { %v3044_v48 = vpop.eup %3043 }
0x1756   : > { %v1902_v49 = vsel %vm925_vm9, %v3044_v48, 0.0  ;;  %v2130_v54 = vpop.xlane.xlu1 %2129 }
0x1757   : > { %1903 = vadd.xlane.f32.xlu1 %v1902_v49  ;;  %v2131_v55 = vsub.f32 %v2127_v38, %v2130_v54 }
0x1759   : > { %v2132_v56 = vmul.f32 1.442695, %v2131_v55  ;;  %v2656_v55 = vld [vmem:[%s3649_s12 + $0x1] ss:$0 sm:$0xff] }
0x175b   : > { %3047 = vpow2.f32 %v2132_v56 }
0x175d   : > { %v3046_v50 = vpop.eup %3045 }
0x175e   : > { %v2018_v53 = vsel %vm925_vm9, %v3046_v50, 0.0 }
0x175f   : > { %2019 = vadd.xlane.f32.xlu0 %v2018_v53  ;;  %v2655_v53 = vld [vmem:[%s3648_s11 + $0x1] ss:$0 sm:$0xff] }
0x1765   : > { %v3048_v58 = vpop.eup %3047 }
0x1766   : > { %v2134_v59 = vsel %vm925_vm9, %v3048_v58, 0.0 }
0x1768   : > { %2024 = vrot.lane.b32.xlu1 %v3468_v52, %s3680_s2 }
0x1775   : > { %1908 = vrot.lane.b32.xlu0 %v3468_v52, %s3681_s23 }
0x178c   : > { %2135 = vadd.xlane.f32.xlu1 %v2134_v59 }
0x179d   : > { %2140 = vrot.lane.b32.xlu1 %v3468_v52, %s3682_s3 }
0x17e4   : > { %v1904_v60 = vpop.xlane.xlu1 %1903 }
0x17e5   : > { %3049 = vrcp.f32 %v1904_v60  ;;  %v3008_v60 = vld [vmem:[%s3652_s15 + $0x48] sm:$0xff]  }
0x17e8   : > { %v2025_v2 = vpop.permute.xlu1 %2024 }
0x17e9   : > { %v2030_v4 = vand.u32 %v2025_v2, %v3289_v57  ;;  %v3014_v2 = vld [vmem:[%s3652_s15 + $0x78] sm:$0xff]  }
0x17ec   : > { %v2020_v61 = vpop.xlane.xlu0 %2019 }
0x17ed   : > { %3051 = vrcp.f32 %v2020_v61  ;;  %v3009_v61 = vld [vmem:[%s3652_s15 + $0x50] sm:$0xff]  }
0x17ef   : > { %v3050_v62 = vpop.eup %3049 }
0x17f0   : > { %v1906_v63 = vmul.f32 %v3050_v62, %v3044_v48  ;;  %v1909_v0 = vpop.permute.xlu0 %1908  ;;  %v3010_v62 = vld [vmem:[%s3652_s15 + $0x58] sm:$0xff]  }
0x17f1   : > { %v1914_v1 = vand.u32 %v1909_v0, %v3289_v57  ;;  %v3012_v0 = vld [vmem:[%s3652_s15 + $0x68] sm:$0xff]  }
0x17f2   : > { %v1907_v3 = vpack.c.bf16 %v1906_v63, %v1906_v63  ;;  %v3011_v63 = vld [vmem:[%s3652_s15 + $0x60] sm:$0xff]  }
0x17f3   : > { %2884 = vmatpush3.bf16.msra.mxu1 %v1914_v1  ;;  %v3013_v1 = vld [vmem:[%s3652_s15 + $0x70] sm:$0xff]  }
0x17f4   : > { %2895 = vmatprep.subr.bf16.mxu1 %v3070_v34 }
0x17f6   : > { %2886 = vmatmul.mubr.msk.bf16.vlgmr.msra.gmra.mrb[44].mxu1 %vm940_vm10, %v1907_v3  ;;  %v2679_v3 = vld [vmem:[%s3651_s14 + $0x1] ss:$0 sm:$0xff] }
0x17f7   : > { %v3052_v5 = vpop.eup %3051  ;;  %2896 = vmatpush3.bf16.msra.mxu1 %v2030_v4  ;;  %2897 = vmatprep.mubr.msk.bf16.mxu1 %vm3071_vm4, %v3070_v34 }
0x17f8   : > { %v2022_v52 = vmul.f32 %v3052_v5, %v3046_v50  ;;  %2907 = vmatprep.subr.bf16.mxu1 %v3070_v34 }
0x17fa   : > { %v2023_v6 = vpack.c.bf16 %v2022_v52, %v2022_v52 }
0x17fe   : > { %2898 = vmatmul.mubr.msk.bf16.vlgmr.msra.gmra.mrb[48].mxu1 %vm940_vm10, %v2023_v6 }
0x17ff   : > { %2909 = vmatprep.mubr.msk.bf16.mxu1 %vm3071_vm4, %v3070_v34 }
0x1819   : > { %v2136_v7 = vpop.xlane.xlu1 %2135 }
0x181a   : > { %3053 = vrcp.f32 %v2136_v7 }
0x181d   : > { %v2141_v8 = vpop.permute.xlu1 %2140 }
0x181e   : > { %v2146_v9 = vand.u32 %v2141_v8, %v3289_v57 }
0x1820   : > { %2908 = vmatpush3.bf16.msra.mxu1 %v2146_v9 }
0x1821   : > { %2921 = vmatprep.subr.bf16.mxu1 %v3070_v34 }
0x1824   : > { %v3054_v10 = vpop.eup %3053 }
0x1825   : > { %v2138_v11 = vmul.f32 %v3054_v10, %v3048_v58 }
0x1827   : > { %v2139_v12 = vpack.c.bf16 %v2138_v11, %v2138_v11 }
0x1829   : > { %2910 = vmatmul.mubr.msk.bf16.vlgmr.msra.gmra.mrb[52].mxu1 %vm940_vm10, %v2139_v12 }
0x182a   : > { %2925 = vmatprep.mubr.msk.bf16.mxu1 %vm3071_vm4, %v3070_v34 }
0x18c9   : > { %v1950_v13 = vpop.f32.mrb[44].mxu1 }
0x18ca   : > { %1957 = vrot.lane.b32.xlu0 %v1950_v13, %s3683_s26  ;;  %v2887_v14 = vpop.f32.mrb[45].mxu1 }
0x18cb   : > { %v1953_v15 = vpop.f32.mrb[46].mxu1 }
0x18cc   : > { %v2888_v16 = vpop.f32.mrb[47].mxu1 }
0x18d1   : > { %v2066_v17 = vpop.f32.mrb[48].mxu1 }
0x18d2   : > { %2073 = vrot.lane.b32.xlu1 %v2066_v17, %s3684_s27  ;;  %v2899_v57 = vpop.f32.mrb[49].mxu1  ;;  %v2683_v17 = vld [vmem:[%s3653_s16 + $0x1] ss:$0 sm:$0xff] }
0x18d3   : > { %v2069_v51 = vpop.f32.mrb[50].mxu1 }
0x18d4   : > { %v2900_v18 = vpop.f32.mrb[51].mxu1 }
0x18fc   : > { %v2182_v21 = vpop.f32.mrb[52].mxu1 }
0x18fd   : > { %2189 = vrot.lane.b32.xlu0 %v2182_v21, %s3685_s22  ;;  %v2911_v22 = vpop.f32.mrb[53].mxu1 }
0x18fe   : > { %v2185_v23 = vpop.f32.mrb[54].mxu1 }
0x18ff   : > { %v2912_v24 = vpop.f32.mrb[55].mxu1 }
0x193c   : > { %v1958_v27 = vpop.permute.xlu0 %1957 }
0x193d   : > { %1960 = vst.msk [vmem:[#allocation3] sm:$0x1f] %vm1108_vm12, %v1958_v27 }
0x1944   : > { %v2074_v28 = vpop.permute.xlu1 %2073 }
0x1945   : > { %2076 = vst.msk [vmem:[#allocation3] sm:$0x1f] %vm1225_vm13, %v2074_v28 }
0x196f   : > { %v2190_v29 = vpop.permute.xlu0 %2189 }
0x1970   : > { %2192 = vst.msk [vmem:[#allocation3] sm:$0x1f] %vm1342_vm14, %v2190_v29 }
0x1977   : > { %v2193_v30 = vld [vmem:[#allocation3] sm:$0x1f] }
0x1978   : > { %v2194_v31 = vpack.c.bf16 %v2193_v30, %v2193_v30 }
0x197a   : > { %2918 = vmatmul.mubr.msk.bf16.vlgmr.msra.gmra.mrb[32].mxu0 %vm829_vm5, %v2194_v31 }
0x197b   : > { %2945 = vmatprep.mubr.msk.bf16.mxu0 %vm3071_vm4, %v3070_v34  ;;  %2930 = vmatpush3.bf16.msra.mxu0 %v3007_v47 }
0x197c   : > { %2931 = vmatprep.subr.bf16.mxu0 %v3070_v34 }
0x197f   : > { %2932 = vmatpush3.bf16.msra.mxu0 %v3008_v60 }
0x1980   : > { %2933 = vmatprep.subr.bf16.mxu0 %v3070_v34 }
0x1983   : > { %2934 = vmatpush3.bf16.msra.mxu0 %v3009_v61 }
0x1984   : > { %2935 = vmatprep.subr.bf16.mxu0 %v3070_v34 }
0x1987   : > { %2936 = vmatpush3.bf16.msra.mxu0 %v3010_v62 }
0x1988   : > { %2937 = vmatprep.subr.bf16.mxu0 %v3070_v34 }
0x198b   : > { %2938 = vmatpush3.bf16.msra.mxu0 %v3011_v63 }
0x198c   : > { %2939 = vmatprep.subr.bf16.mxu0 %v3070_v34 }
0x198f   : > { %2940 = vmatpush3.bf16.msra.mxu0 %v3012_v0 }
0x1990   : > { %2941 = vmatprep.subr.bf16.mxu0 %v3070_v34 }
0x1993   : > { %2942 = vmatpush3.bf16.msra.mxu0 %v3013_v1 }
0x1994   : > { %2943 = vmatprep.subr.bf16.mxu0 %v3070_v34 }
0x1997   : > { %2944 = vmatpush3.bf16.msra.mxu0 %v3014_v2 }
0x1a4d   : > { %v2244_v32 = vpop.f32.mrb[32].mxu0 }
0x1a4e   : > { %v2250_v35 = vadd.f32 %v2244_v32, %v3442_v25  ;;  %v2919_v36 = vpop.f32.mrb[33].mxu0  ;;  %v3005_v25 = vld [vmem:[%s3650_s13 + $0x10] sm:$0xff]  }
0x1a4f   : > { %v2247_v37 = vpop.f32.mrb[34].mxu0  ;;  %2922 = vmatpush3.bf16.msra.mxu1 %v3005_v25 }
0x1a50   : > { %v3563_v38 = vadd.f32 %v2652_v33, %v2250_v35  ;;  %v2920_v39 = vpop.f32.mrb[35].mxu0  ;;  %2923 = vmatprep.subr.bf16.mxu1 %v3070_v34  ;;  %v2692_v35 = vld [vmem:[%s3654_s17] ss:$0 sm:$0xff] }
0x1a51   : > { %v2693_v37 = vld [vmem:[%s3655_s18] ss:$0 sm:$0xff] }
0x1a52   : > { %v2264_v40 = vsel %vm772_vm3, %v3563_v38, 0.0 }
0x1a53   : > { %2265 = vadd.xlane.f32.xlu1 %v2264_v40  ;;  %2924 = vmatpush3.bf16.msra.mxu1 %v3006_v46 }
0x1ae0   : > { %v2266_v41 = vpop.xlane.xlu1 %2265 }
0x1ae1   : > { %v2267_v42 = vmul.f32 0.03125, %v2266_v41 }
0x1ae3   : > { %v2268_v43 = vsub.f32 %v3563_v38, %v2267_v42 }
0x1ae5   : > { %v2269_v44 = vmul.f32 %v2268_v43, %v2268_v43 }
0x1ae7   : > { %v2270_v45 = vsel %vm772_vm3, %v2269_v44, 0.0 }
0x1ae8   : > { %2271 = vadd.xlane.f32.xlu0 %v2270_v45 }
0x1b75   : > { %v2272_v26 = vpop.xlane.xlu0 %2271 }
0x1b76   : > { %v2273_v48 = vmul.f32 0.03125, %v2272_v26 }
0x1b78   : > { %v2274_v49 = vadd.f32 1e-06, %v2273_v48 }
0x1b7a   : > { %3055 = vrsqrt.f32 %v2274_v49 }
0x1b84   : > { %v3056_v50 = vpop.eup %3055 }
0x1b85   : > { %v2276_v54 = vmul.f32 %v3056_v50, %v2268_v43 }
0x1b87   : > { %v2283_v56 = vmul.f32 %v2655_v53, %v2276_v54 }
0x1b89   : > { %v2290_v58 = vadd.f32 %v2656_v55, %v2283_v56 }
0x1b8b   : > { %v2317_v59 = vpack.c.bf16 %v2290_v58, %v2290_v58 }
0x1b8d   : > { %2926 = vmatmul.mubr.msk.bf16.vlgmr.msra.gmra.mrb[56].mxu1 %vm829_vm5, %v2317_v59 }
0x1c60   : > { %v2373_v4 = vpop.f32.mrb[56].mxu1 }
0x1c61   : > { %v2374_v5 = vadd.f32 %v2679_v3, %v2373_v4  ;;  %v2927_v52 = vpop.f32.mrb[57].mxu1 }
0x1c62   : > { %v2376_v6 = vpop.f32.mrb[58].mxu1 }
0x1c63   : > { %v2380_v7 = vmul.f32 0.044715, %v2374_v5  ;;  %v2928_v8 = vpop.f32.mrb[59].mxu1  ;;  %v2379_v14 = vmul.f32 0.5, %v2374_v5 }
0x1c65   : > { %v2381_v9 = vmul.f32 %v2380_v7, %v2374_v5 }
0x1c67   : > { %v2382_v10 = vmul.f32 %v2381_v9, %v2374_v5 }
0x1c69   : > { %v2383_v11 = vadd.f32 %v2382_v10, %v2374_v5 }
0x1c6b   : > { %v2384_v12 = vmul.f32 0.7978846, %v2383_v11 }
0x1c6d   : > { %3057 = vtanh.f32 %v2384_v12 }
0x1c77   : > { %v3058_v13 = vpop.eup %3057 }
0x1c78   : > { %v2386_v15 = vadd.f32 1.0, %v3058_v13 }
0x1c7a   : > { %v2387_v34 = vmul.f32 %v2386_v15, %v2379_v14 }
0x1c7c   : > { %v2388_v16 = vpack.c.bf16 %v2387_v34, %v2387_v34 }
0x1c7e   : > { %2946 = vmatmul.mubr.bf16.vlgmr.msra.gmra.mrb[36].mxu0 %v2388_v16 }
0x1d51   : > { %v2477_v57 = vpop.f32.mrb[36].mxu0 }
0x1d52   : > { %v2478_v51 = vadd.f32 %v2683_v17, %v2477_v57  ;;  %v2947_v18 = vpop.f32.mrb[37].mxu0 }
0x1d53   : > { %v2480_v19 = vpop.f32.mrb[38].mxu0 }
0x1d54   : > { %v2948_v20 = vpop.f32.mrb[39].mxu0  ;;  %v2483_v21 = vadd.f32 %v2478_v51, %v3563_v38 }
0x1d56   : > { %v2486_v22 = vsel %vm772_vm3, %v2483_v21, 0.0 }
0x1d57   : > { %2487 = vadd.xlane.f32.xlu0 %v2486_v22 }
0x1de4   : > { %v2488_v23 = vpop.xlane.xlu0 %2487 }
0x1de5   : > { %v2489_v24 = vmul.f32 0.03125, %v2488_v23 }
0x1de7   : > { %v2490_v27 = vsub.f32 %v2483_v21, %v2489_v24 }
0x1de9   : > { %v2491_v28 = vmul.f32 %v2490_v27, %v2490_v27 }
0x1deb   : > { %v2492_v29 = vsel %vm772_vm3, %v2491_v28, 0.0 }
0x1dec   : > { %2493 = vadd.xlane.f32.xlu1 %v2492_v29 }
0x1e79   : > { %v2494_v30 = vpop.xlane.xlu1 %2493 }
0x1e7a   : > { %v2495_v31 = vmul.f32 0.03125, %v2494_v30 }
0x1e7c   : > { %v2496_v32 = vadd.f32 1e-06, %v2495_v31 }
0x1e7e   : > { %3059 = vrsqrt.f32 %v2496_v32 }
0x1e88   : > { %v3060_v33 = vpop.eup %3059 }
0x1e89   : > { %v2498_v36 = vmul.f32 %v3060_v33, %v2490_v27 }
0x1e8b   : > { %v2505_v38 = vmul.f32 %v2692_v35, %v2498_v36 }
0x1e8d   : > { %v2512_v39 = vadd.f32 %v2693_v37, %v2505_v38 }
0x1e8f   : > { %2513 = vst.msk [vmem:[%s600_s25] sm:$0x1f] %vm772_vm3, %v2512_v39 }
0x1e90 PF: > { %s29_s0 = sadd.s32 1, %s3067_s0  }
0x1e91   : > { %p26_p4 = scmp.ge.s32.totalorder %s29_s0, 4  }
0x1e93   :  { %28 = sbr.rel (!%p26_p4) target bundleno = 5 (0x5), region = 138 }

</bundles_post_ra>
